<compile_context>
chip_gen: v7x
topology: tpu7x:2x2x1
jax: 0.10.0
libtpu: 0.0.40
codegen_flags: <defaults>
</compile_context>

<pallas_src>
import functools

import jax
import jax.numpy as jnp
from jax.experimental import pallas as pl
from jax.experimental.pallas import tpu as pltpu


# ----------------------------------------------------------------------------
# Pallas kernel: whole sequence recurrence + output head, single invocation
# ----------------------------------------------------------------------------
def _gru_seq_kernel(T, BP, xs_ref, wxg_ref, whg_ref, wnh_ref, bg_ref, wo_ref,
                    bo_ref, h_out_ref, o_out_ref, gx_scr):
    HP = whg_ref.shape[0]

    # ---- Prologue (runs once) -----------------------------------------
    # All-timestep input projection in one batched MXU pass:
    #   [T*BP, IP] @ [IP, 3*HP] + bg -> [T*BP, 3*HP]
    #   columns: [reset | update | candidate] x-parts (each HP wide).
    gx_scr[...] = (
        jnp.dot(xs_ref[...], wxg_ref[...], preferred_element_type=jnp.float32)
        + bg_ref[...]
    )

    # Hoisted, read-once weights for the h-dependent (serial) matmuls.
    whg = whg_ref[...]          # [HP, 2*HP]  bf16: reset | update h-parts
    wnh = wnh_ref[...]          # [HP,   HP]  bf16: candidate h-part

    # ---- Fully-unrolled time recurrence --------------------------------
    # T is a static Python int -> straight-line code, equivalent to
    # lax.fori_loop(0, T, ..., unroll=True); h is carried as a value.
    h = jnp.zeros((BP, HP), jnp.float32)              # init_hidden(): zeros
    for t in range(T):
        gx = gx_scr[pl.ds(t * BP, BP), :]                          # [BP, 3*HP]
        gh = jnp.dot(h.astype(jnp.bfloat16), whg,
                     preferred_element_type=jnp.float32)           # [BP, 2*HP]
        r = jax.nn.sigmoid(gx[:, 0:HP] + gh[:, 0:HP])
        z = jax.nn.sigmoid(gx[:, HP:2 * HP] + gh[:, HP:2 * HP])
        n = jnp.tanh(gx[:, 2 * HP:3 * HP]
                     + jnp.dot((h * r).astype(jnp.bfloat16), wnh,
                               preferred_element_type=jnp.float32))
        h = (1.0 - z) * h + z * n

    # ---- Epilogue: final hidden + output head ---------------------------
    h_out_ref[...] = h
    o_out_ref[...] = (
        jnp.dot(h.astype(jnp.bfloat16), wo_ref[...],
                preferred_element_type=jnp.float32)
        + bo_ref[...]
    )


# ----------------------------------------------------------------------------
# Wrappers
# ----------------------------------------------------------------------------
def _round_up(n, m):
    return ((n + m - 1) // m) * m


def init_params(key, input_size, hidden_size, output_size):
    """Deterministic init mimicking nn.Linear's uniform(-1/sqrt(fan_in), +)."""
    ks = jax.random.split(key, 8)
    fan_gate = input_size + hidden_size
    bg = 1.0 / jnp.sqrt(jnp.float32(fan_gate))
    bo = 1.0 / jnp.sqrt(jnp.float32(hidden_size))
    u = lambda k, shape, b: jax.random.uniform(k, shape, jnp.float32, -b, b)
    return {
        "wr": u(ks[0], (hidden_size, fan_gate), bg),
        "br": u(ks[1], (hidden_size,), bg),
        "wz": u(ks[2], (hidden_size, fan_gate), bg),
        "bz": u(ks[3], (hidden_size,), bg),
        "wn": u(ks[4], (hidden_size, fan_gate), bg),
        "bn": u(ks[5], (hidden_size,), bg),
        "wo": u(ks[6], (output_size, hidden_size), bo),
        "bo": u(ks[7], (output_size,), bo),
    }


def prepare_params(params, input_size, hidden_size, output_size):
    """One-time weight prep (outside the time loop): split torch [out, in]
    gate weights into x-/h-parts, transpose to [in, out], fuse across gates,
    zero-pad to lane-dense (multiple-of-128) tiles, cast weights to bf16
    (biases stay f32)."""
    I, H, O = input_size, hidden_size, output_size
    IP, HP, OP = _round_up(I, 128), _round_up(H, 128), _round_up(O, 128)

    def split_t(w):                      # torch Linear weight: [H, I+H]
        return jnp.transpose(w[:, :I]), jnp.transpose(w[:, I:])   # [I,H], [H,H]

    wrx, wrh = split_t(params["wr"])
    wzx, wzh = split_t(params["wz"])
    wnx, wnh = split_t(params["wn"])

    wxg = jnp.zeros((IP, 3 * HP), jnp.float32)
    wxg = (wxg.at[:I, 0:H].set(wrx)
              .at[:I, HP:HP + H].set(wzx)
              .at[:I, 2 * HP:2 * HP + H].set(wnx))

    whg = jnp.zeros((HP, 2 * HP), jnp.float32)
    whg = whg.at[:H, 0:H].set(wrh).at[:H, HP:HP + H].set(wzh)

    wnh_p = jnp.zeros((HP, HP), jnp.float32).at[:H, :H].set(wnh)

    bg = jnp.zeros((1, 3 * HP), jnp.float32)
    bg = (bg.at[0, 0:H].set(params["br"])
            .at[0, HP:HP + H].set(params["bz"])
            .at[0, 2 * HP:2 * HP + H].set(params["bn"]))

    wo_p = jnp.zeros((HP, OP), jnp.float32).at[:H, :O].set(jnp.transpose(params["wo"]))
    bo_p = jnp.zeros((1, OP), jnp.float32).at[0, :O].set(params["bo"])

    return {
        "wxg": wxg.astype(jnp.bfloat16),
        "whg": whg.astype(jnp.bfloat16),
        "wnh": wnh_p.astype(jnp.bfloat16),
        "bg": bg,                                   # f32
        "wo": wo_p.astype(jnp.bfloat16),
        "bo": bo_p,                                 # f32
    }


@jax.jit
def gru_sequence(xs_padded, wxg, whg, wnh, bg, wo, bo):
    """Whole recurrence + output head in one grid-less pallas_call.

    xs_padded: [T, BP, IP] f32, zero-padded (BP multiple of 8, IP of 128).
    Returns (h_final_padded [BP, HP] f32, logits_padded [BP, OP] f32).
    """
    T, BP, IP = xs_padded.shape
    HP = whg.shape[0]
    OP = wo.shape[1]

    # Flatten time into the sublane dim (free in XLA) and cast matmul operand
    # to bf16; padding stays exactly zero.
    xs_flat = xs_padded.reshape(T * BP, IP).astype(jnp.bfloat16)

    kernel = functools.partial(_gru_seq_kernel, T, BP)
    vmem = pl.BlockSpec(memory_space=pltpu.MemorySpace.VMEM)

    return pl.pallas_call(
        kernel,
        out_shape=(jax.ShapeDtypeStruct((BP, HP), jnp.float32),
                   jax.ShapeDtypeStruct((BP, OP), jnp.float32)),
        in_specs=[vmem] * 7,                       # whole arrays VMEM-resident
        out_specs=(vmem, vmem),
        scratch_shapes=[pltpu.VMEM((T * BP, 3 * HP), jnp.float32)],  # gx_all
    )(xs_flat, wxg, whg, wnh, bg, wo, bo)


# ----------------------------------------------------------------------------
# Pure-JAX reference (matches the PyTorch forward exactly, f32 throughout)
# ----------------------------------------------------------------------------
def gru_forward_ref(x, h, params):
    combined = jnp.concatenate([x, h], axis=1)
    r = jax.nn.sigmoid(combined @ params["wr"].T + params["br"])
    z = jax.nn.sigmoid(combined @ params["wz"].T + params["bz"])
    combined_reset = jnp.concatenate([x, h * r], axis=1)
    n = jnp.tanh(combined_reset @ params["wn"].T + params["bn"])
    return (1.0 - z) * h + z * n


if __name__ == "__main__":
    input_size, hidden_size, output_size = 16, 32, 18   # name-classification sizes
    batch, seq_len = 2, 8

    key = jax.random.PRNGKey(0)
    kp, kx = jax.random.split(key)
    params = init_params(kp, input_size, hidden_size, output_size)
    prep = prepare_params(params, input_size, hidden_size, output_size)

    xs = jax.random.normal(kx, (seq_len, batch, input_size), dtype=jnp.float32)

    # Pad batch to 8 sublanes, input features to 128 lanes (zero padding).
    BP = _round_up(batch, 8)
    IP = _round_up(input_size, 128)
    xs_p = jnp.zeros((seq_len, BP, IP), jnp.float32).at[:, :batch, :input_size].set(xs)

    h_pad, o_pad = gru_sequence(xs_p, prep["wxg"], prep["whg"], prep["wnh"],
                                prep["bg"], prep["wo"], prep["bo"])
    jax.block_until_ready((h_pad, o_pad))

    h = h_pad[:batch, :hidden_size]
    logits = o_pad[:batch, :output_size]

    # Pure-JAX f32 reference over the same sequence.
    h_ref = jnp.zeros((batch, hidden_size), jnp.float32)
    for t in range(seq_len):
        h_ref = gru_forward_ref(xs[t], h_ref, params)
    logits_ref = h_ref @ params["wo"].T + params["bo"]

    # Kernel feeds bf16 operands to the MXU (per perf review) with f32
    # accumulation; compare against the exact-f32 reference with a tolerance
    # that covers bf16 operand quantization.
    assert jnp.allclose(h, h_ref, atol=3e-2, rtol=3e-2), "hidden mismatch vs reference"
    assert jnp.allclose(logits, logits_ref, atol=3e-2, rtol=3e-2), "logits mismatch vs reference"
    assert logits.shape == (batch, output_size)
    print("KERNEL_OK")
</pallas_src>

<mosaic_0001>
module attributes {stable_mosaic.version = 11 : i64} {
  func.func @_gru_seq_kernel(%arg0: memref<64x128xbf16, #tpu.memory_space<vmem>>, %arg1: memref<128x384xbf16, #tpu.memory_space<vmem>>, %arg2: memref<128x256xbf16, #tpu.memory_space<vmem>>, %arg3: memref<128x128xbf16, #tpu.memory_space<vmem>>, %arg4: memref<1x384xf32, #tpu.memory_space<vmem>>, %arg5: memref<128x128xbf16, #tpu.memory_space<vmem>>, %arg6: memref<1x128xf32, #tpu.memory_space<vmem>>, %arg7: memref<8x128xf32, #tpu.memory_space<vmem>>, %arg8: memref<8x128xf32, #tpu.memory_space<vmem>>, %arg9: memref<64x384xf32, #tpu.memory_space<vmem>>) attributes {dimension_semantics = [], scalar_prefetch = 0 : i64, scratch_operands = 1 : i64, tpu.core_type = #tpu.core_type<tc>} {
    %c0 = arith.constant 0 : index
    %c0_0 = arith.constant 0 : index
    %0 = vector.load %arg0[%c0, %c0_0] : memref<64x128xbf16, #tpu.memory_space<vmem>>, vector<64x128xbf16>
    %c0_1 = arith.constant 0 : index
    %c0_2 = arith.constant 0 : index
    %1 = vector.load %arg1[%c0_1, %c0_2] : memref<128x384xbf16, #tpu.memory_space<vmem>>, vector<128x384xbf16>
    %cst = arith.constant dense<0.000000e+00> : vector<64x384xf32>
    %2 = tpu.matmul %0, %1, %cst {dimension_numbers = #tpu.dot_dimension_numbers<[1], [0], [0], [1], [0, 0, 1, 1], [], []>} : vector<64x128xbf16>, vector<128x384xbf16>, vector<64x384xf32> -> vector<64x384xf32>
    %c0_3 = arith.constant 0 : index
    %c0_4 = arith.constant 0 : index
    %3 = vector.load %arg4[%c0_3, %c0_4] : memref<1x384xf32, #tpu.memory_space<vmem>>, vector<1x384xf32>
    %4 = vector.broadcast %3 : vector<1x384xf32> to vector<64x384xf32>
    %5 = arith.addf %2, %4 : vector<64x384xf32>
    %c0_5 = arith.constant 0 : index
    %c0_6 = arith.constant 0 : index
    %6 = vector.load %arg9[%c0_5, %c0_6] : memref<64x384xf32, #tpu.memory_space<vmem>>, vector<64x384xf32>
    tpu.vector_store %arg9[%c0_5, %c0_6], %5 {strides = array<i32>} : memref<64x384xf32, #tpu.memory_space<vmem>>, vector<64x384xf32>,
    %c0_7 = arith.constant 0 : index
    %c0_8 = arith.constant 0 : index
    %7 = vector.load %arg2[%c0_7, %c0_8] : memref<128x256xbf16, #tpu.memory_space<vmem>>, vector<128x256xbf16>
    %c0_9 = arith.constant 0 : index
    %c0_10 = arith.constant 0 : index
    %8 = vector.load %arg3[%c0_9, %c0_10] : memref<128x128xbf16, #tpu.memory_space<vmem>>, vector<128x128xbf16>
    %cst_11 = arith.constant 0.000000e+00 : f32
    %9 = vector.broadcast %cst_11 : f32 to vector<8x128xf32>
    %c0_12 = arith.constant 0 : index
    %c0_13 = arith.constant 0 : index
    %10 = vector.load %arg9[%c0_12, %c0_13] : memref<64x384xf32, #tpu.memory_space<vmem>>, vector<8x384xf32>
    %11 = arith.truncf %9 : vector<8x128xf32> to vector<8x128xbf16>
    %cst_14 = arith.constant dense<0.000000e+00> : vector<8x256xf32>
    %12 = tpu.matmul %11, %7, %cst_14 {dimension_numbers = #tpu.dot_dimension_numbers<[1], [0], [0], [1], [0, 0, 1, 1], [], []>} : vector<8x128xbf16>, vector<128x256xbf16>, vector<8x256xf32> -> vector<8x256xf32>
    %13 = vector.extract_strided_slice %10 {offsets = [0, 0], sizes = [8, 128], strides = [1, 1]} : vector<8x384xf32> to vector<8x128xf32>
    %14 = vector.extract_strided_slice %12 {offsets = [0, 0], sizes = [8, 128], strides = [1, 1]} : vector<8x256xf32> to vector<8x128xf32>
    %15 = arith.addf %13, %14 : vector<8x128xf32>
    %16 = arith.negf %15 : vector<8x128xf32>
    %17 = math.exp %16 : vector<8x128xf32>
    %cst_15 = arith.constant 1.000000e+00 : f32
    %18 = vector.broadcast %cst_15 : f32 to vector<8x128xf32>
    %19 = arith.addf %18, %17 : vector<8x128xf32>
    %20 = arith.divf %18, %19 : vector<8x128xf32>
    %21 = vector.extract_strided_slice %10 {offsets = [0, 128], sizes = [8, 128], strides = [1, 1]} : vector<8x384xf32> to vector<8x128xf32>
    %22 = vector.extract_strided_slice %12 {offsets = [0, 128], sizes = [8, 128], strides = [1, 1]} : vector<8x256xf32> to vector<8x128xf32>
    %23 = arith.addf %21, %22 : vector<8x128xf32>
    %24 = arith.negf %23 : vector<8x128xf32>
    %25 = math.exp %24 : vector<8x128xf32>
    %cst_16 = arith.constant 1.000000e+00 : f32
    %26 = vector.broadcast %cst_16 : f32 to vector<8x128xf32>
    %27 = arith.addf %26, %25 : vector<8x128xf32>
    %28 = arith.divf %26, %27 : vector<8x128xf32>
    %29 = vector.extract_strided_slice %10 {offsets = [0, 256], sizes = [8, 128], strides = [1, 1]} : vector<8x384xf32> to vector<8x128xf32>
    %30 = arith.mulf %9, %20 : vector<8x128xf32>
    %31 = arith.truncf %30 : vector<8x128xf32> to vector<8x128xbf16>
    %cst_17 = arith.constant dense<0.000000e+00> : vector<8x128xf32>
    %32 = tpu.matmul %31, %8, %cst_17 {dimension_numbers = #tpu.dot_dimension_numbers<[1], [0], [0], [1], [0, 0, 1, 1], [], []>} : vector<8x128xbf16>, vector<128x128xbf16>, vector<8x128xf32> -> vector<8x128xf32>
    %33 = arith.addf %29, %32 : vector<8x128xf32>
    %34 = math.tanh %33 : vector<8x128xf32>
    %cst_18 = arith.constant 1.000000e+00 : f32
    %35 = vector.broadcast %cst_18 : f32 to vector<8x128xf32>
    %36 = arith.subf %35, %28 : vector<8x128xf32>
    %37 = arith.mulf %36, %9 : vector<8x128xf32>
    %38 = arith.mulf %28, %34 : vector<8x128xf32>
    %39 = arith.addf %37, %38 : vector<8x128xf32>
    %c8 = arith.constant 8 : index
    %c0_19 = arith.constant 0 : index
    %40 = vector.load %arg9[%c8, %c0_19] : memref<64x384xf32, #tpu.memory_space<vmem>>, vector<8x384xf32>
    %41 = arith.truncf %39 : vector<8x128xf32> to vector<8x128xbf16>
    %cst_20 = arith.constant dense<0.000000e+00> : vector<8x256xf32>
    %42 = tpu.matmul %41, %7, %cst_20 {dimension_numbers = #tpu.dot_dimension_numbers<[1], [0], [0], [1], [0, 0, 1, 1], [], []>} : vector<8x128xbf16>, vector<128x256xbf16>, vector<8x256xf32> -> vector<8x256xf32>
    %43 = vector.extract_strided_slice %40 {offsets = [0, 0], sizes = [8, 128], strides = [1, 1]} : vector<8x384xf32> to vector<8x128xf32>
    %44 = vector.extract_strided_slice %42 {offsets = [0, 0], sizes = [8, 128], strides = [1, 1]} : vector<8x256xf32> to vector<8x128xf32>
    %45 = arith.addf %43, %44 : vector<8x128xf32>
    %46 = arith.negf %45 : vector<8x128xf32>
    %47 = math.exp %46 : vector<8x128xf32>
    %cst_21 = arith.constant 1.000000e+00 : f32
    %48 = vector.broadcast %cst_21 : f32 to vector<8x128xf32>
    %49 = arith.addf %48, %47 : vector<8x128xf32>
    %50 = arith.divf %48, %49 : vector<8x128xf32>
    %51 = vector.extract_strided_slice %40 {offsets = [0, 128], sizes = [8, 128], strides = [1, 1]} : vector<8x384xf32> to vector<8x128xf32>
    %52 = vector.extract_strided_slice %42 {offsets = [0, 128], sizes = [8, 128], strides = [1, 1]} : vector<8x256xf32> to vector<8x128xf32>
    %53 = arith.addf %51, %52 : vector<8x128xf32>
    %54 = arith.negf %53 : vector<8x128xf32>
    %55 = math.exp %54 : vector<8x128xf32>
    %cst_22 = arith.constant 1.000000e+00 : f32
    %56 = vector.broadcast %cst_22 : f32 to vector<8x128xf32>
    %57 = arith.addf %56, %55 : vector<8x128xf32>
    %58 = arith.divf %56, %57 : vector<8x128xf32>
    %59 = vector.extract_strided_slice %40 {offsets = [0, 256], sizes = [8, 128], strides = [1, 1]} : vector<8x384xf32> to vector<8x128xf32>
    %60 = arith.mulf %39, %50 : vector<8x128xf32>
    %61 = arith.truncf %60 : vector<8x128xf32> to vector<8x128xbf16>
    %cst_23 = arith.constant dense<0.000000e+00> : vector<8x128xf32>
    %62 = tpu.matmul %61, %8, %cst_23 {dimension_numbers = #tpu.dot_dimension_numbers<[1], [0], [0], [1], [0, 0, 1, 1], [], []>} : vector<8x128xbf16>, vector<128x128xbf16>, vector<8x128xf32> -> vector<8x128xf32>
    %63 = arith.addf %59, %62 : vector<8x128xf32>
    %64 = math.tanh %63 : vector<8x128xf32>
    %cst_24 = arith.constant 1.000000e+00 : f32
    %65 = vector.broadcast %cst_24 : f32 to vector<8x128xf32>
    %66 = arith.subf %65, %58 : vector<8x128xf32>
    %67 = arith.mulf %66, %39 : vector<8x128xf32>
    %68 = arith.mulf %58, %64 : vector<8x128xf32>
    %69 = arith.addf %67, %68 : vector<8x128xf32>
    %c16 = arith.constant 16 : index
    %c0_25 = arith.constant 0 : index
    %70 = vector.load %arg9[%c16, %c0_25] : memref<64x384xf32, #tpu.memory_space<vmem>>, vector<8x384xf32>
    %71 = arith.truncf %69 : vector<8x128xf32> to vector<8x128xbf16>
    %cst_26 = arith.constant dense<0.000000e+00> : vector<8x256xf32>
    %72 = tpu.matmul %71, %7, %cst_26 {dimension_numbers = #tpu.dot_dimension_numbers<[1], [0], [0], [1], [0, 0, 1, 1], [], []>} : vector<8x128xbf16>, vector<128x256xbf16>, vector<8x256xf32> -> vector<8x256xf32>
    %73 = vector.extract_strided_slice %70 {offsets = [0, 0], sizes = [8, 128], strides = [1, 1]} : vector<8x384xf32> to vector<8x128xf32>
    %74 = vector.extract_strided_slice %72 {offsets = [0, 0], sizes = [8, 128], strides = [1, 1]} : vector<8x256xf32> to vector<8x128xf32>
    %75 = arith.addf %73, %74 : vector<8x128xf32>
    %76 = arith.negf %75 : vector<8x128xf32>
    %77 = math.exp %76 : vector<8x128xf32>
    %cst_27 = arith.constant 1.000000e+00 : f32
    %78 = vector.broadcast %cst_27 : f32 to vector<8x128xf32>
    %79 = arith.addf %78, %77 : vector<8x128xf32>
    %80 = arith.divf %78, %79 : vector<8x128xf32>
    %81 = vector.extract_strided_slice %70 {offsets = [0, 128], sizes = [8, 128], strides = [1, 1]} : vector<8x384xf32> to vector<8x128xf32>
    %82 = vector.extract_strided_slice %72 {offsets = [0, 128], sizes = [8, 128], strides = [1, 1]} : vector<8x256xf32> to vector<8x128xf32>
    %83 = arith.addf %81, %82 : vector<8x128xf32>
    %84 = arith.negf %83 : vector<8x128xf32>
    %85 = math.exp %84 : vector<8x128xf32>
    %cst_28 = arith.constant 1.000000e+00 : f32
    %86 = vector.broadcast %cst_28 : f32 to vector<8x128xf32>
    %87 = arith.addf %86, %85 : vector<8x128xf32>
    %88 = arith.divf %86, %87 : vector<8x128xf32>
    %89 = vector.extract_strided_slice %70 {offsets = [0, 256], sizes = [8, 128], strides = [1, 1]} : vector<8x384xf32> to vector<8x128xf32>
    %90 = arith.mulf %69, %80 : vector<8x128xf32>
    %91 = arith.truncf %90 : vector<8x128xf32> to vector<8x128xbf16>
    %cst_29 = arith.constant dense<0.000000e+00> : vector<8x128xf32>
    %92 = tpu.matmul %91, %8, %cst_29 {dimension_numbers = #tpu.dot_dimension_numbers<[1], [0], [0], [1], [0, 0, 1, 1], [], []>} : vector<8x128xbf16>, vector<128x128xbf16>, vector<8x128xf32> -> vector<8x128xf32>
    %93 = arith.addf %89, %92 : vector<8x128xf32>
    %94 = math.tanh %93 : vector<8x128xf32>
    %cst_30 = arith.constant 1.000000e+00 : f32
    %95 = vector.broadcast %cst_30 : f32 to vector<8x128xf32>
    %96 = arith.subf %95, %88 : vector<8x128xf32>
    %97 = arith.mulf %96, %69 : vector<8x128xf32>
    %98 = arith.mulf %88, %94 : vector<8x128xf32>
    %99 = arith.addf %97, %98 : vector<8x128xf32>
    %c24 = arith.constant 24 : index
    %c0_31 = arith.constant 0 : index
    %100 = vector.load %arg9[%c24, %c0_31] : memref<64x384xf32, #tpu.memory_space<vmem>>, vector<8x384xf32>
    %101 = arith.truncf %99 : vector<8x128xf32> to vector<8x128xbf16>
    %cst_32 = arith.constant dense<0.000000e+00> : vector<8x256xf32>
    %102 = tpu.matmul %101, %7, %cst_32 {dimension_numbers = #tpu.dot_dimension_numbers<[1], [0], [0], [1], [0, 0, 1, 1], [], []>} : vector<8x128xbf16>, vector<128x256xbf16>, vector<8x256xf32> -> vector<8x256xf32>
    %103 = vector.extract_strided_slice %100 {offsets = [0, 0], sizes = [8, 128], strides = [1, 1]} : vector<8x384xf32> to vector<8x128xf32>
    %104 = vector.extract_strided_slice %102 {offsets = [0, 0], sizes = [8, 128], strides = [1, 1]} : vector<8x256xf32> to vector<8x128xf32>
    %105 = arith.addf %103, %104 : vector<8x128xf32>
    %106 = arith.negf %105 : vector<8x128xf32>
    %107 = math.exp %106 : vector<8x128xf32>
    %cst_33 = arith.constant 1.000000e+00 : f32
    %108 = vector.broadcast %cst_33 : f32 to vector<8x128xf32>
    %109 = arith.addf %108, %107 : vector<8x128xf32>
    %110 = arith.divf %108, %109 : vector<8x128xf32>
    %111 = vector.extract_strided_slice %100 {offsets = [0, 128], sizes = [8, 128], strides = [1, 1]} : vector<8x384xf32> to vector<8x128xf32>
    %112 = vector.extract_strided_slice %102 {offsets = [0, 128], sizes = [8, 128], strides = [1, 1]} : vector<8x256xf32> to vector<8x128xf32>
    %113 = arith.addf %111, %112 : vector<8x128xf32>
    %114 = arith.negf %113 : vector<8x128xf32>
    %115 = math.exp %114 : vector<8x128xf32>
    %cst_34 = arith.constant 1.000000e+00 : f32
    %116 = vector.broadcast %cst_34 : f32 to vector<8x128xf32>
    %117 = arith.addf %116, %115 : vector<8x128xf32>
    %118 = arith.divf %116, %117 : vector<8x128xf32>
    %119 = vector.extract_strided_slice %100 {offsets = [0, 256], sizes = [8, 128], strides = [1, 1]} : vector<8x384xf32> to vector<8x128xf32>
    %120 = arith.mulf %99, %110 : vector<8x128xf32>
    %121 = arith.truncf %120 : vector<8x128xf32> to vector<8x128xbf16>
    %cst_35 = arith.constant dense<0.000000e+00> : vector<8x128xf32>
    %122 = tpu.matmul %121, %8, %cst_35 {dimension_numbers = #tpu.dot_dimension_numbers<[1], [0], [0], [1], [0, 0, 1, 1], [], []>} : vector<8x128xbf16>, vector<128x128xbf16>, vector<8x128xf32> -> vector<8x128xf32>
    %123 = arith.addf %119, %122 : vector<8x128xf32>
    %124 = math.tanh %123 : vector<8x128xf32>
    %cst_36 = arith.constant 1.000000e+00 : f32
    %125 = vector.broadcast %cst_36 : f32 to vector<8x128xf32>
    %126 = arith.subf %125, %118 : vector<8x128xf32>
    %127 = arith.mulf %126, %99 : vector<8x128xf32>
    %128 = arith.mulf %118, %124 : vector<8x128xf32>
    %129 = arith.addf %127, %128 : vector<8x128xf32>
    %c32 = arith.constant 32 : index
    %c0_37 = arith.constant 0 : index
    %130 = vector.load %arg9[%c32, %c0_37] : memref<64x384xf32, #tpu.memory_space<vmem>>, vector<8x384xf32>
    %131 = arith.truncf %129 : vector<8x128xf32> to vector<8x128xbf16>
    %cst_38 = arith.constant dense<0.000000e+00> : vector<8x256xf32>
    %132 = tpu.matmul %131, %7, %cst_38 {dimension_numbers = #tpu.dot_dimension_numbers<[1], [0], [0], [1], [0, 0, 1, 1], [], []>} : vector<8x128xbf16>, vector<128x256xbf16>, vector<8x256xf32> -> vector<8x256xf32>
    %133 = vector.extract_strided_slice %130 {offsets = [0, 0], sizes = [8, 128], strides = [1, 1]} : vector<8x384xf32> to vector<8x128xf32>
    %134 = vector.extract_strided_slice %132 {offsets = [0, 0], sizes = [8, 128], strides = [1, 1]} : vector<8x256xf32> to vector<8x128xf32>
    %135 = arith.addf %133, %134 : vector<8x128xf32>
    %136 = arith.negf %135 : vector<8x128xf32>
    %137 = math.exp %136 : vector<8x128xf32>
    %cst_39 = arith.constant 1.000000e+00 : f32
    %138 = vector.broadcast %cst_39 : f32 to vector<8x128xf32>
    %139 = arith.addf %138, %137 : vector<8x128xf32>
    %140 = arith.divf %138, %139 : vector<8x128xf32>
    %141 = vector.extract_strided_slice %130 {offsets = [0, 128], sizes = [8, 128], strides = [1, 1]} : vector<8x384xf32> to vector<8x128xf32>
    %142 = vector.extract_strided_slice %132 {offsets = [0, 128], sizes = [8, 128], strides = [1, 1]} : vector<8x256xf32> to vector<8x128xf32>
    %143 = arith.addf %141, %142 : vector<8x128xf32>
    %144 = arith.negf %143 : vector<8x128xf32>
    %145 = math.exp %144 : vector<8x128xf32>
    %cst_40 = arith.constant 1.000000e+00 : f32
    %146 = vector.broadcast %cst_40 : f32 to vector<8x128xf32>
    %147 = arith.addf %146, %145 : vector<8x128xf32>
    %148 = arith.divf %146, %147 : vector<8x128xf32>
    %149 = vector.extract_strided_slice %130 {offsets = [0, 256], sizes = [8, 128], strides = [1, 1]} : vector<8x384xf32> to vector<8x128xf32>
    %150 = arith.mulf %129, %140 : vector<8x128xf32>
    %151 = arith.truncf %150 : vector<8x128xf32> to vector<8x128xbf16>
    %cst_41 = arith.constant dense<0.000000e+00> : vector<8x128xf32>
    %152 = tpu.matmul %151, %8, %cst_41 {dimension_numbers = #tpu.dot_dimension_numbers<[1], [0], [0], [1], [0, 0, 1, 1], [], []>} : vector<8x128xbf16>, vector<128x128xbf16>, vector<8x128xf32> -> vector<8x128xf32>
    %153 = arith.addf %149, %152 : vector<8x128xf32>
    %154 = math.tanh %153 : vector<8x128xf32>
    %cst_42 = arith.constant 1.000000e+00 : f32
    %155 = vector.broadcast %cst_42 : f32 to vector<8x128xf32>
    %156 = arith.subf %155, %148 : vector<8x128xf32>
    %157 = arith.mulf %156, %129 : vector<8x128xf32>
    %158 = arith.mulf %148, %154 : vector<8x128xf32>
    %159 = arith.addf %157, %158 : vector<8x128xf32>
    %c40 = arith.constant 40 : index
    %c0_43 = arith.constant 0 : index
    %160 = vector.load %arg9[%c40, %c0_43] : memref<64x384xf32, #tpu.memory_space<vmem>>, vector<8x384xf32>
    %161 = arith.truncf %159 : vector<8x128xf32> to vector<8x128xbf16>
    %cst_44 = arith.constant dense<0.000000e+00> : vector<8x256xf32>
    %162 = tpu.matmul %161, %7, %cst_44 {dimension_numbers = #tpu.dot_dimension_numbers<[1], [0], [0], [1], [0, 0, 1, 1], [], []>} : vector<8x128xbf16>, vector<128x256xbf16>, vector<8x256xf32> -> vector<8x256xf32>
    %163 = vector.extract_strided_slice %160 {offsets = [0, 0], sizes = [8, 128], strides = [1, 1]} : vector<8x384xf32> to vector<8x128xf32>
    %164 = vector.extract_strided_slice %162 {offsets = [0, 0], sizes = [8, 128], strides = [1, 1]} : vector<8x256xf32> to vector<8x128xf32>
    %165 = arith.addf %163, %164 : vector<8x128xf32>
    %166 = arith.negf %165 : vector<8x128xf32>
    %167 = math.exp %166 : vector<8x128xf32>
    %cst_45 = arith.constant 1.000000e+00 : f32
    %168 = vector.broadcast %cst_45 : f32 to vector<8x128xf32>
    %169 = arith.addf %168, %167 : vector<8x128xf32>
    %170 = arith.divf %168, %169 : vector<8x128xf32>
    %171 = vector.extract_strided_slice %160 {offsets = [0, 128], sizes = [8, 128], strides = [1, 1]} : vector<8x384xf32> to vector<8x128xf32>
    %172 = vector.extract_strided_slice %162 {offsets = [0, 128], sizes = [8, 128], strides = [1, 1]} : vector<8x256xf32> to vector<8x128xf32>
    %173 = arith.addf %171, %172 : vector<8x128xf32>
    %174 = arith.negf %173 : vector<8x128xf32>
    %175 = math.exp %174 : vector<8x128xf32>
    %cst_46 = arith.constant 1.000000e+00 : f32
    %176 = vector.broadcast %cst_46 : f32 to vector<8x128xf32>
    %177 = arith.addf %176, %175 : vector<8x128xf32>
    %178 = arith.divf %176, %177 : vector<8x128xf32>
    %179 = vector.extract_strided_slice %160 {offsets = [0, 256], sizes = [8, 128], strides = [1, 1]} : vector<8x384xf32> to vector<8x128xf32>
    %180 = arith.mulf %159, %170 : vector<8x128xf32>
    %181 = arith.truncf %180 : vector<8x128xf32> to vector<8x128xbf16>
    %cst_47 = arith.constant dense<0.000000e+00> : vector<8x128xf32>
    %182 = tpu.matmul %181, %8, %cst_47 {dimension_numbers = #tpu.dot_dimension_numbers<[1], [0], [0], [1], [0, 0, 1, 1], [], []>} : vector<8x128xbf16>, vector<128x128xbf16>, vector<8x128xf32> -> vector<8x128xf32>
    %183 = arith.addf %179, %182 : vector<8x128xf32>
    %184 = math.tanh %183 : vector<8x128xf32>
    %cst_48 = arith.constant 1.000000e+00 : f32
    %185 = vector.broadcast %cst_48 : f32 to vector<8x128xf32>
    %186 = arith.subf %185, %178 : vector<8x128xf32>
    %187 = arith.mulf %186, %159 : vector<8x128xf32>
    %188 = arith.mulf %178, %184 : vector<8x128xf32>
    %189 = arith.addf %187, %188 : vector<8x128xf32>
    %c48 = arith.constant 48 : index
    %c0_49 = arith.constant 0 : index
    %190 = vector.load %arg9[%c48, %c0_49] : memref<64x384xf32, #tpu.memory_space<vmem>>, vector<8x384xf32>
    %191 = arith.truncf %189 : vector<8x128xf32> to vector<8x128xbf16>
    %cst_50 = arith.constant dense<0.000000e+00> : vector<8x256xf32>
    %192 = tpu.matmul %191, %7, %cst_50 {dimension_numbers = #tpu.dot_dimension_numbers<[1], [0], [0], [1], [0, 0, 1, 1], [], []>} : vector<8x128xbf16>, vector<128x256xbf16>, vector<8x256xf32> -> vector<8x256xf32>
    %193 = vector.extract_strided_slice %190 {offsets = [0, 0], sizes = [8, 128], strides = [1, 1]} : vector<8x384xf32> to vector<8x128xf32>
    %194 = vector.extract_strided_slice %192 {offsets = [0, 0], sizes = [8, 128], strides = [1, 1]} : vector<8x256xf32> to vector<8x128xf32>
    %195 = arith.addf %193, %194 : vector<8x128xf32>
    %196 = arith.negf %195 : vector<8x128xf32>
    %197 = math.exp %196 : vector<8x128xf32>
    %cst_51 = arith.constant 1.000000e+00 : f32
    %198 = vector.broadcast %cst_51 : f32 to vector<8x128xf32>
    %199 = arith.addf %198, %197 : vector<8x128xf32>
    %200 = arith.divf %198, %199 : vector<8x128xf32>
    %201 = vector.extract_strided_slice %190 {offsets = [0, 128], sizes = [8, 128], strides = [1, 1]} : vector<8x384xf32> to vector<8x128xf32>
    %202 = vector.extract_strided_slice %192 {offsets = [0, 128], sizes = [8, 128], strides = [1, 1]} : vector<8x256xf32> to vector<8x128xf32>
    %203 = arith.addf %201, %202 : vector<8x128xf32>
    %204 = arith.negf %203 : vector<8x128xf32>
    %205 = math.exp %204 : vector<8x128xf32>
    %cst_52 = arith.constant 1.000000e+00 : f32
    %206 = vector.broadcast %cst_52 : f32 to vector<8x128xf32>
    %207 = arith.addf %206, %205 : vector<8x128xf32>
    %208 = arith.divf %206, %207 : vector<8x128xf32>
    %209 = vector.extract_strided_slice %190 {offsets = [0, 256], sizes = [8, 128], strides = [1, 1]} : vector<8x384xf32> to vector<8x128xf32>
    %210 = arith.mulf %189, %200 : vector<8x128xf32>
    %211 = arith.truncf %210 : vector<8x128xf32> to vector<8x128xbf16>
    %cst_53 = arith.constant dense<0.000000e+00> : vector<8x128xf32>
    %212 = tpu.matmul %211, %8, %cst_53 {dimension_numbers = #tpu.dot_dimension_numbers<[1], [0], [0], [1], [0, 0, 1, 1], [], []>} : vector<8x128xbf16>, vector<128x128xbf16>, vector<8x128xf32> -> vector<8x128xf32>
    %213 = arith.addf %209, %212 : vector<8x128xf32>
    %214 = math.tanh %213 : vector<8x128xf32>
    %cst_54 = arith.constant 1.000000e+00 : f32
    %215 = vector.broadcast %cst_54 : f32 to vector<8x128xf32>
    %216 = arith.subf %215, %208 : vector<8x128xf32>
    %217 = arith.mulf %216, %189 : vector<8x128xf32>
    %218 = arith.mulf %208, %214 : vector<8x128xf32>
    %219 = arith.addf %217, %218 : vector<8x128xf32>
    %c56 = arith.constant 56 : index
    %c0_55 = arith.constant 0 : index
    %220 = vector.load %arg9[%c56, %c0_55] : memref<64x384xf32, #tpu.memory_space<vmem>>, vector<8x384xf32>
    %221 = arith.truncf %219 : vector<8x128xf32> to vector<8x128xbf16>
    %cst_56 = arith.constant dense<0.000000e+00> : vector<8x256xf32>
    %222 = tpu.matmul %221, %7, %cst_56 {dimension_numbers = #tpu.dot_dimension_numbers<[1], [0], [0], [1], [0, 0, 1, 1], [], []>} : vector<8x128xbf16>, vector<128x256xbf16>, vector<8x256xf32> -> vector<8x256xf32>
    %223 = vector.extract_strided_slice %220 {offsets = [0, 0], sizes = [8, 128], strides = [1, 1]} : vector<8x384xf32> to vector<8x128xf32>
    %224 = vector.extract_strided_slice %222 {offsets = [0, 0], sizes = [8, 128], strides = [1, 1]} : vector<8x256xf32> to vector<8x128xf32>
    %225 = arith.addf %223, %224 : vector<8x128xf32>
    %226 = arith.negf %225 : vector<8x128xf32>
    %227 = math.exp %226 : vector<8x128xf32>
    %cst_57 = arith.constant 1.000000e+00 : f32
    %228 = vector.broadcast %cst_57 : f32 to vector<8x128xf32>
    %229 = arith.addf %228, %227 : vector<8x128xf32>
    %230 = arith.divf %228, %229 : vector<8x128xf32>
    %231 = vector.extract_strided_slice %220 {offsets = [0, 128], sizes = [8, 128], strides = [1, 1]} : vector<8x384xf32> to vector<8x128xf32>
    %232 = vector.extract_strided_slice %222 {offsets = [0, 128], sizes = [8, 128], strides = [1, 1]} : vector<8x256xf32> to vector<8x128xf32>
    %233 = arith.addf %231, %232 : vector<8x128xf32>
    %234 = arith.negf %233 : vector<8x128xf32>
    %235 = math.exp %234 : vector<8x128xf32>
    %cst_58 = arith.constant 1.000000e+00 : f32
    %236 = vector.broadcast %cst_58 : f32 to vector<8x128xf32>
    %237 = arith.addf %236, %235 : vector<8x128xf32>
    %238 = arith.divf %236, %237 : vector<8x128xf32>
    %239 = vector.extract_strided_slice %220 {offsets = [0, 256], sizes = [8, 128], strides = [1, 1]} : vector<8x384xf32> to vector<8x128xf32>
    %240 = arith.mulf %219, %230 : vector<8x128xf32>
    %241 = arith.truncf %240 : vector<8x128xf32> to vector<8x128xbf16>
    %cst_59 = arith.constant dense<0.000000e+00> : vector<8x128xf32>
    %242 = tpu.matmul %241, %8, %cst_59 {dimension_numbers = #tpu.dot_dimension_numbers<[1], [0], [0], [1], [0, 0, 1, 1], [], []>} : vector<8x128xbf16>, vector<128x128xbf16>, vector<8x128xf32> -> vector<8x128xf32>
    %243 = arith.addf %239, %242 : vector<8x128xf32>
    %244 = math.tanh %243 : vector<8x128xf32>
    %cst_60 = arith.constant 1.000000e+00 : f32
    %245 = vector.broadcast %cst_60 : f32 to vector<8x128xf32>
    %246 = arith.subf %245, %238 : vector<8x128xf32>
    %247 = arith.mulf %246, %219 : vector<8x128xf32>
    %248 = arith.mulf %238, %244 : vector<8x128xf32>
    %249 = arith.addf %247, %248 : vector<8x128xf32>
    %c0_61 = arith.constant 0 : index
    %c0_62 = arith.constant 0 : index
    %250 = vector.load %arg7[%c0_61, %c0_62] : memref<8x128xf32, #tpu.memory_space<vmem>>, vector<8x128xf32>
    tpu.vector_store %arg7[%c0_61, %c0_62], %249 {strides = array<i32>} : memref<8x128xf32, #tpu.memory_space<vmem>>, vector<8x128xf32>,
    %251 = arith.truncf %249 : vector<8x128xf32> to vector<8x128xbf16>
    %c0_63 = arith.constant 0 : index
    %c0_64 = arith.constant 0 : index
    %252 = vector.load %arg5[%c0_63, %c0_64] : memref<128x128xbf16, #tpu.memory_space<vmem>>, vector<128x128xbf16>
    %cst_65 = arith.constant dense<0.000000e+00> : vector<8x128xf32>
    %253 = tpu.matmul %251, %252, %cst_65 {dimension_numbers = #tpu.dot_dimension_numbers<[1], [0], [0], [1], [0, 0, 1, 1], [], []>} : vector<8x128xbf16>, vector<128x128xbf16>, vector<8x128xf32> -> vector<8x128xf32>
    %c0_66 = arith.constant 0 : index
    %c0_67 = arith.constant 0 : index
    %254 = vector.load %arg6[%c0_66, %c0_67] : memref<1x128xf32, #tpu.memory_space<vmem>>, vector<1x128xf32>
    %255 = vector.broadcast %254 : vector<1x128xf32> to vector<8x128xf32>
    %256 = arith.addf %253, %255 : vector<8x128xf32>
    %c0_68 = arith.constant 0 : index
    %c0_69 = arith.constant 0 : index
    %257 = vector.load %arg8[%c0_68, %c0_69] : memref<8x128xf32, #tpu.memory_space<vmem>>, vector<8x128xf32>
    tpu.vector_store %arg8[%c0_68, %c0_69], %256 {strides = array<i32>} : memref<8x128xf32, #tpu.memory_space<vmem>>, vector<8x128xf32>,
    return
  }
}

</mosaic_0001>

<bundles_post_ra>
// kernel: gru_sequence.1
= control target key start
LH: loop header
LB: loop body
LE: loop exit
PB: predicated region body
PF: predicated region fallthrough
CT: control target
= control target key end

     0   :  { %14 = vsyncpa [#allocation4], 0  ;;  %s2901_s0 = inlined_call_operand.vmem [shape: bf16[64,128], index: 0, kind: input, shape index: {}]   ;;  %s2902_s1 = inlined_call_operand.hbm [shape: bf16[128,384], index: 1, kind: input, shape index: {}]   ;;  %s2903_s2 = inlined_call_operand.hbm [shape: bf16[128,256], index: 2, kind: input, shape index: {}]   ;;  %s2904_s3 = inlined_call_operand.vmem [shape: bf16[128,128], index: 3, kind: input, shape index: {}]   ;;  %s2905_s4 = inlined_call_operand.vmem [shape: f32[1,384], index: 4, kind: input, shape index: {}]   ;;  %s2906_s5 = inlined_call_operand.hbm [shape: bf16[128,128], index: 5, kind: input, shape index: {}]   ;;  %s2907_s6 = inlined_call_operand.vmem [shape: f32[1,128], index: 6, kind: input, shape index: {}]   ;;  %s2908_s7 = inlined_call_operand.hbm [shape: f32[8,128], index: 7, kind: output, shape index: {0}]   ;;  %s2909_s8 = inlined_call_operand.hbm [shape: f32[8,128], index: 8, kind: output, shape index: {1}]  }
   0x1   :  { %15 = vsyncpa [#allocation7], 0 }
   0x2   :  { %16 = vsyncpa [#allocation5], 0 }
   0x3   :  { %17 = vsyncpa [#allocation11], 0  ;;  %s2280_s27 = smov [#allocation6]   ;;  %s2162_s9 = scalar_lea.hbm %s2903_s2, 2048 }
   0x4   :  { %s37_s28 = sshll.u32 %s2280_s27, 4  ;;  %p2163_p0 = scmp.ne.s32.totalorder %s2903_s2, %s2162_s9  ;;  %s38_s28 = int_to_ptr.vmem [resolvable:$true] %s37_s28 }
   0x5   :  { %p2166_p1 = scmp.lt.u32.totalorder %s2162_s9, %s2903_s2 }
   0x7   :  { %p2168_p2 = pnand %p2166_p1, %p2163_p0 }
   0x9   :  { %2171 = shalt.err (!%p2168_p2)
}
   0xa   :  { %s2172_s14 = scalar_lea.vmem %s38_s28, 2048  ;;  %p2177_p4 = scmp.lt.s32.totalorder %s38_s28, %s38_s28 }
   0xb   :  { %p2173_p3 = scmp.ne.s32.totalorder %s38_s28, %s2172_s14  ;;  %p2178_p5 = scmp.lt.s32.totalorder %s2172_s14, %s2172_s14 }
   0xd   :  { %p2179_p6 = por %p2178_p5, %p2177_p4 }
   0xf   :  { %p2180_p7 = pnand %p2179_p6, %p2173_p3 }
  0x11   :  { %2183 = shalt.err (!%p2180_p7)
}
  0x12   :  { %s2281_s15 = smov 128   ;;  %s2282_s16 = smov 8  }
  0x13   :  { %43 = dma.hbm_to_vmem [thread:$0]  %s2903_s2, 2048, %s38_s28, [#allocation7], %s2281_s15, %s2281_s15, %s2282_s16  }
  0x14   :  { %s2283_s19 = smov [#allocation3]   ;;  %s2184_s23 = scalar_lea.hbm %s2902_s1, 3072 }
  0x15   :  { %s25_s20 = sshll.u32 %s2283_s19, 4  ;;  %p2185_p8 = scmp.ne.s32.totalorder %s2902_s1, %s2184_s23  ;;  %s26_s20 = int_to_ptr.vmem [resolvable:$true] %s25_s20 }
  0x16   :  { %p2188_p9 = scmp.lt.u32.totalorder %s2184_s23, %s2902_s1 }
  0x18   :  { %p2190_p10 = pnand %p2188_p9, %p2185_p8 }
  0x1a   :  { %2193 = shalt.err (!%p2190_p10)
}
  0x1b   :  { %s2194_s29 = scalar_lea.vmem %s26_s20, 3072  ;;  %p2199_p12 = scmp.lt.s32.totalorder %s26_s20, %s26_s20 }
  0x1c   :  { %p2195_p11 = scmp.ne.s32.totalorder %s26_s20, %s2194_s29  ;;  %p2200_p13 = scmp.lt.s32.totalorder %s2194_s29, %s2194_s29 }
  0x1e   :  { %p2201_p0 = por %p2200_p13, %p2199_p12 }
  0x20   :  { %p2202_p1 = pnand %p2201_p0, %p2195_p11 }
  0x22   :  { %2205 = shalt.err (!%p2202_p1)
}
  0x23   :  { %s2284_s2 = smov 192   ;;  %s2285_s28 = smov 12  }
  0x24   :  { %31 = dma.hbm_to_vmem [thread:$0]  %s2902_s1, 3072, %s26_s20, [#allocation4], %s2284_s2, %s2284_s2, %s2285_s28  }
  0x25   :  { %s2286_s10 = smov [#allocation8]   ;;  %s2206_s14 = scalar_lea.hbm %s2906_s5, 1024 }
  0x26   :  { %s53_s11 = sshll.u32 %s2286_s10, 4  ;;  %p2207_p2 = scmp.ne.s32.totalorder %s2906_s5, %s2206_s14  ;;  %s54_s11 = int_to_ptr.vmem [resolvable:$true] %s53_s11 }
  0x27   :  { %p2210_p3 = scmp.lt.u32.totalorder %s2206_s14, %s2906_s5 }
  0x29   :  { %p2212_p4 = pnand %p2210_p3, %p2207_p2 }
  0x2b   :  { %2215 = shalt.err (!%p2212_p4)
}
  0x2c   :  { %s2216_s19 = scalar_lea.vmem %s54_s11, 1024  ;;  %p2221_p6 = scmp.lt.s32.totalorder %s54_s11, %s54_s11 }
  0x2d   :  { %p2217_p5 = scmp.ne.s32.totalorder %s54_s11, %s2216_s19  ;;  %p2222_p7 = scmp.lt.s32.totalorder %s2216_s19, %s2216_s19 }
  0x2f   :  { %p2223_p8 = por %p2222_p7, %p2221_p6 }
  0x31   :  { %p2224_p9 = pnand %p2223_p8, %p2217_p5 }
  0x33   :  { %2227 = shalt.err (!%p2224_p9)
}
  0x34   :  { %s2287_s1 = smov 64   ;;  %s2288_s20 = smov 4  }
  0x35   :  { %59 = dma.hbm_to_vmem [thread:$0]  %s2906_s5, 1024, %s54_s11, [#allocation7], %s2287_s1, %s2287_s1, %s2288_s20  }
  0x36   :  { %2272 = dma.done.wait [#allocation4], 3072  }
  0x37   :  { %2273 = vsyncadd [#allocation4], 4294964224 }
  0x38   :  { %2274 = dma.done.wait [#allocation7], 3072  }
  0x39   :  { %2275 = vsyncadd [#allocation7], 4294964224  ;;  %v2912_v0 = vmov 0   ;;  %v1990_v1 = vld [vmem:[#allocation3 + $0x4] ss:$12 sps:$4 sm:$0xff]   ;;  %v2396_v23 = vld [vmem:[%s2901_s0 + $0x8] sm:$0xff]   ;;  %v114_v54 = vlaneseq }
  0x3a   :  { %313 = vmatprep.mubr.bf16.mxu0 %v2912_v0  ;;  %v1992_v2 = vld [vmem:[#allocation3] ss:$12 sps:$4 sm:$0xff]   ;;  %281 = vmatprep.subr.bf16.mxu0 %v1990_v1  ;;  %v1993_v3 = vld [vmem:[#allocation3 + $0x1c] ss:$12 sps:$4 sm:$0xff]   ;;  %v1995_v4 = vld [vmem:[#allocation3 + $0x18] ss:$12 sps:$4 sm:$0xff]  }
  0x3b   :  { %282 = vmatpush1.bf16.msra.mxu0 %v1992_v2  ;;  %v1996_v5 = vld [vmem:[#allocation3 + $0x34] ss:$12 sps:$4 sm:$0xff]   ;;  %v1998_v6 = vld [vmem:[#allocation3 + $0x30] ss:$12 sps:$4 sm:$0xff]   ;;  %v1999_v7 = vld [vmem:[#allocation3 + $0x4c] ss:$12 sps:$4 sm:$0xff]  }
  0x3c   :  { %283 = vmatprep.subr.bf16.mxu0 %v1993_v3  ;;  %v2001_v8 = vld [vmem:[#allocation3 + $0x48] ss:$12 sps:$4 sm:$0xff]   ;;  %v2014_v9 = vld [vmem:[%s2901_s0] sm:$0xff]   ;;  %v2010_v15 = vld [vmem:[#allocation3 + $0x90] ss:$12 sps:$4 sm:$0xff]   ;;  %v2910_v46 = vmov 0.0  }
  0x3d   :  { %v2002_v10 = vld [vmem:[#allocation3 + $0x64] ss:$12 sps:$4 sm:$0xff]   ;;  %1788 = vmatprep.mubr.bf16.mxu1 %v2014_v9  ;;  %v2004_v11 = vld [vmem:[#allocation3 + $0x60] ss:$12 sps:$4 sm:$0xff]   ;;  %v2005_v12 = vld [vmem:[#allocation3 + $0x7c] ss:$12 sps:$4 sm:$0xff]  }
  0x3e   :  { %v2007_v13 = vld [vmem:[#allocation3 + $0x78] ss:$12 sps:$4 sm:$0xff]   ;;  %v2008_v14 = vld [vmem:[#allocation3 + $0x94] ss:$12 sps:$4 sm:$0xff]   ;;  %v2045_v40 = vld [vmem:[#allocation3 + $0x50] ss:$12 sps:$4 sm:$0xff]  }
  0x3f   :  { %284 = vmatpush1.bf16.msra.mxu0 %v1995_v4  ;;  %v2011_v16 = vld [vmem:[#allocation3 + $0xac] ss:$12 sps:$4 sm:$0xff]   ;;  %v2013_v17 = vld [vmem:[#allocation3 + $0xa8] ss:$12 sps:$4 sm:$0xff]   ;;  %v2049_v44 = vld [vmem:[#allocation3 + $0xb0] ss:$12 sps:$4 sm:$0xff]  }
  0x40   :  { %285 = vmatprep.subr.bf16.mxu0 %v1996_v5  ;;  %v2379_v18 = vld [vmem:[#allocation6 + $0x4] ss:$8 sps:$4 sm:$0xff]   ;;  %v2381_v19 = vld [vmem:[#allocation6] ss:$8 sps:$4 sm:$0xff]   ;;  %v2383_v20 = vld [vmem:[#allocation6 + $0x14] ss:$8 sps:$4 sm:$0xff]  }
  0x41   :  { %v2386_v21 = vld [vmem:[#allocation6 + $0x10] ss:$8 sps:$4 sm:$0xff]   ;;  %v2388_v22 = vld [vmem:[#allocation6 + $0x24] ss:$8 sps:$4 sm:$0xff]   ;;  %v2398_v24 = vld [vmem:[#allocation6 + $0x20] ss:$8 sps:$4 sm:$0xff]  }
  0x42   :  { %v2400_v25 = vld [vmem:[#allocation6 + $0x34] ss:$8 sps:$4 sm:$0xff]   ;;  %v2406_v26 = vld [vmem:[#allocation6 + $0x30] ss:$8 sps:$4 sm:$0xff]   ;;  %v2410_v27 = vld [vmem:[#allocation6 + $0x44] ss:$8 sps:$4 sm:$0xff]  }
  0x43   :  { %286 = vmatpush1.bf16.msra.mxu0 %v1998_v6  ;;  %v2415_v28 = vld [vmem:[%s2901_s0 + $0x10] sm:$0xff]   ;;  %v2418_v29 = vld [vmem:[#allocation6 + $0x40] ss:$8 sps:$4 sm:$0xff]   ;;  %v2429_v32 = vld [vmem:[#allocation6 + $0x64] ss:$8 sps:$4 sm:$0xff]   ;;  %vm2291_vm0 = vmmov 0  }
  0x44   :  { %287 = vmatprep.subr.bf16.mxu0 %v1999_v7  ;;  %v2421_v30 = vld [vmem:[#allocation6 + $0x54] ss:$8 sps:$4 sm:$0xff]   ;;  %v2425_v31 = vld [vmem:[#allocation6 + $0x50] ss:$8 sps:$4 sm:$0xff]   ;;  %v2437_v34 = vld [vmem:[#allocation6 + $0x60] ss:$8 sps:$4 sm:$0xff]  }
  0x45   :  { %v2434_v33 = vld [vmem:[%s2901_s0 + $0x18] sm:$0xff]   ;;  %v2042_v37 = vld [vmem:[#allocation3 + $0x8] ss:$12 sps:$4 sm:$0xff]   ;;  %v2043_v38 = vld [vmem:[#allocation3 + $0x20] ss:$12 sps:$4 sm:$0xff]   ;;  %v2530_v55 = vshrl.u32 %v114_v54, 7 }
  0x46   :  { %v2440_v35 = vld [vmem:[#allocation6 + $0x74] ss:$8 sps:$4 sm:$0xff]   ;;  %v2444_v36 = vld [vmem:[#allocation6 + $0x70] ss:$8 sps:$4 sm:$0xff]   ;;  %1772 = vmatprep.subr.bf16.mxu1 %v2042_v37  ;;  %v2047_v42 = vld [vmem:[#allocation3 + $0x80] ss:$12 sps:$4 sm:$0xff]  }
  0x47   :  { %288 = vmatpush1.bf16.msra.mxu0 %v2001_v8  ;;  %1773 = vmatpush3.bf16.msra.mxu1 %v2042_v37  ;;  %v2044_v39 = vld [vmem:[#allocation3 + $0x38] ss:$12 sps:$4 sm:$0xff]   ;;  %v2046_v41 = vld [vmem:[#allocation3 + $0x68] ss:$12 sps:$4 sm:$0xff]   ;;  %v116_v56 = vsub.s32 0, %v2530_v55  ;;  %v120_v58 = vsub.s32 1, %v2530_v55 }
  0x48   :  { %289 = vmatprep.subr.bf16.mxu0 %v2002_v10  ;;  %1774 = vmatprep.subr.bf16.mxu1 %v2043_v38  ;;  %v2048_v43 = vld [vmem:[#allocation3 + $0x98] ss:$12 sps:$4 sm:$0xff]   ;;  %v2481_v47 = vld [vmem:[%s2904_s3 + $0x8] sm:$0xff]   ;;  %v2489_v48 = vld [vmem:[%s2904_s3 + $0x10] sm:$0xff]  }
  0x49   :  { %v2472_v45 = vld [vmem:[%s2904_s3] sm:$0xff]   ;;  %v2496_v49 = vld [vmem:[%s2904_s3 + $0x18] sm:$0xff]   ;;  %v2510_v51 = vld [vmem:[%s2904_s3 + $0x28] sm:$0xff]  }
  0x4a   :  { %v2503_v50 = vld [vmem:[%s2904_s3 + $0x20] sm:$0xff]   ;;  %v2517_v52 = vld [vmem:[%s2904_s3 + $0x30] sm:$0xff]   ;;  %v2524_v53 = vld [vmem:[%s2904_s3 + $0x38] sm:$0xff]   ;;  %s2292_s3 = smov [#allocation9]  }
  0x4b   :  { %290 = vmatpush1.bf16.msra.mxu0 %v2004_v11  ;;  %1775 = vmatpush3.bf16.msra.mxu1 %v2043_v38  ;;  %v2536_v57 = vld [vmem:[%s2905_s4] sm:$0x7]  ;;  %s1578_s4 = sshll.u32 %s2292_s3, 4  ;;  %s1579_s4 = int_to_ptr.vmem [resolvable:$true] %s1578_s4 }
  0x4c   :  { %291 = vmatprep.subr.bf16.mxu0 %v2005_v12  ;;  %1776 = vmatprep.subr.bf16.mxu1 %v2044_v39  ;;  %v117_v60 = vrot.slane %v2536_v57, %v116_v56  ;;  %v121_v62 = vrot.slane %v2536_v57, %v120_v58  ;;  %s2228_s5 = scalar_lea.vmem %s1579_s4, 128  ;;  %p2233_p11 = scmp.lt.s32.totalorder %s1579_s4, %s1579_s4 }
  0x4d   :  { %p2229_p10 = scmp.ne.s32.totalorder %s1579_s4, %s2228_s5  ;;  %p2234_p12 = scmp.lt.s32.totalorder %s2228_s5, %s2228_s5 }
  0x4f   :  { %292 = vmatpush1.bf16.msra.mxu0 %v2007_v13  ;;  %1777 = vmatpush3.bf16.msra.mxu1 %v2044_v39  ;;  %p2235_p13 = por %p2234_p12, %p2233_p11 }
  0x50   :  { %293 = vmatprep.subr.bf16.mxu0 %v2008_v14  ;;  %1778 = vmatprep.subr.bf16.mxu1 %v2045_v40 }
  0x51   :  { %p2236_p0 = pnand %p2235_p13, %p2229_p10 }
  0x53   :  { %294 = vmatpush1.bf16.msra.mxu0 %v2010_v15  ;;  %1779 = vmatpush3.bf16.msra.mxu1 %v2045_v40 }
  0x54   :  { %295 = vmatprep.subr.bf16.mxu0 %v2011_v16  ;;  %1780 = vmatprep.subr.bf16.mxu1 %v2046_v41 }
  0x57   :  { %296 = vmatpush1.bf16.msra.mxu0 %v2013_v17  ;;  %1781 = vmatpush3.bf16.msra.mxu1 %v2046_v41 }
  0x58   :  { %558 = vmatprep.subr.bf16.mxu0 %v2379_v18  ;;  %1782 = vmatprep.subr.bf16.mxu1 %v2047_v42 }
  0x5a   :  { %314 = vmatmul.mubr.bf16.vlgmr.msra.gmra.mrb[0].mxu0 %v2014_v9 }
  0x5b   :  { %559 = vmatpush1.bf16.msra.mxu0 %v2381_v19  ;;  %323 = vmatprep.mubr.bf16.mxu0 %v2912_v0 }
  0x5c   :  { %560 = vmatprep.subr.bf16.mxu0 %v2383_v20  ;;  %1783 = vmatpush3.bf16.msra.mxu1 %v2047_v42 }
  0x5d   :  { %1784 = vmatprep.subr.bf16.mxu1 %v2048_v43 }
  0x5f   :  { %561 = vmatpush1.bf16.msra.mxu0 %v2386_v21 }
  0x60   :  { %562 = vmatprep.subr.bf16.mxu0 %v2388_v22  ;;  %1785 = vmatpush3.bf16.msra.mxu1 %v2048_v43 }
  0x61   :  { %1786 = vmatprep.subr.bf16.mxu1 %v2049_v44 }
  0x62   :  { %324 = vmatmul.mubr.bf16.gmra.mrb[4].mxu0 %v2396_v23 }
  0x63   :  { %563 = vmatpush1.bf16.msra.mxu0 %v2398_v24  ;;  %333 = vmatprep.mubr.bf16.mxu0 %v2912_v0 }
  0x64   :  { %564 = vmatprep.subr.bf16.mxu0 %v2400_v25  ;;  %1787 = vmatpush3.bf16.msra.mxu1 %v2049_v44 }
  0x65   :  { %1796 = vmatprep.subr.bf16.mxu1 %v2910_v46 }
  0x67   :  { %565 = vmatpush1.bf16.msra.mxu0 %v2406_v26  ;;  %1789 = vmatmul.mubr.bf16.vlgmr.msra.gmra.mrb[0].mxu1 %v2396_v23 }
  0x68   :  { %566 = vmatprep.subr.bf16.mxu0 %v2410_v27  ;;  %1792 = vmatprep.mubr.bf16.mxu1 %v2415_v28 }
  0x69   :  { %1797 = vmatpush3.bf16.msra.mxu1 %v2472_v45 }
  0x6a   :  { %334 = vmatmul.mubr.bf16.gmra.mrb[8].mxu0 %v2415_v28  ;;  %1798 = vmatprep.subr.bf16.mxu1 %v2910_v46 }
  0x6b   :  { %567 = vmatpush1.bf16.msra.mxu0 %v2418_v29  ;;  %343 = vmatprep.mubr.bf16.mxu0 %v2912_v0 }
  0x6c   :  { %568 = vmatprep.subr.bf16.mxu0 %v2421_v30 }
  0x6d   :  { %1799 = vmatpush3.bf16.msra.mxu1 %v2481_v47 }
  0x6e   :  { %1800 = vmatprep.subr.bf16.mxu1 %v2910_v46 }
  0x6f   :  { %569 = vmatpush1.bf16.msra.mxu0 %v2425_v31  ;;  %1793 = vmatmul.mubr.bf16.gmra.mrb[4].mxu1 %v2434_v33 }
  0x70   :  { %570 = vmatprep.subr.bf16.mxu0 %v2429_v32  ;;  %1812 = vmatprep.mubr.msk.bf16.mxu1 %vm2291_vm0, %v2910_v46 }
  0x71   :  { %1801 = vmatpush3.bf16.msra.mxu1 %v2489_v48 }
  0x72   :  { %344 = vmatmul.mubr.bf16.gmra.mrb[12].mxu0 %v2434_v33  ;;  %1802 = vmatprep.subr.bf16.mxu1 %v2910_v46 }
  0x73   :  { %571 = vmatpush1.bf16.msra.mxu0 %v2437_v34  ;;  %590 = vmatprep.mubr.bf16.mxu0 %v2912_v0 }
  0x74   :  { %572 = vmatprep.subr.bf16.mxu0 %v2440_v35 }
  0x75   :  { %1803 = vmatpush3.bf16.msra.mxu1 %v2496_v49 }
  0x76   :  { %1804 = vmatprep.subr.bf16.mxu1 %v2910_v46 }
  0x77   :  { %573 = vmatpush1.bf16.msra.mxu0 %v2444_v36 }
  0x78   :  { %713 = vmatprep.subr.bf16.mxu0 %v2379_v18 }
  0x79   :  { %1805 = vmatpush3.bf16.msra.mxu1 %v2503_v50 }
  0x7a   :  { %591 = vmatmul.mubr.bf16.vlgmr.msra.gmra.mrb[16].mxu0 %v2912_v0  ;;  %1806 = vmatprep.subr.bf16.mxu1 %v2910_v46 }
  0x7b   :  { %714 = vmatpush1.bf16.msra.mxu0 %v2381_v19  ;;  %745 = vmatprep.mubr.bf16.mxu0 %v2912_v0 }
  0x7c   :  { %715 = vmatprep.subr.bf16.mxu0 %v2383_v20 }
  0x7d   :  { %1807 = vmatpush3.bf16.msra.mxu1 %v2510_v51 }
  0x7e   :  { %1808 = vmatprep.subr.bf16.mxu1 %v2910_v46 }
  0x7f   :  { %716 = vmatpush1.bf16.msra.mxu0 %v2386_v21 }
  0x80   :  { %717 = vmatprep.subr.bf16.mxu0 %v2388_v22 }
  0x81   :  { %1809 = vmatpush3.bf16.msra.mxu1 %v2517_v52 }
  0x82   :  { %1810 = vmatprep.subr.bf16.mxu1 %v2910_v46 }
  0x83   :  { %718 = vmatpush1.bf16.msra.mxu0 %v2398_v24 }
  0x84   :  { %719 = vmatprep.subr.bf16.mxu0 %v2400_v25 }
  0x85   :  { %1811 = vmatpush3.bf16.msra.mxu1 %v2524_v53 }
  0x86   :  { %1816 = vmatprep.subr.bf16.mxu1 %v2910_v46 }
  0x87   :  { %720 = vmatpush1.bf16.msra.mxu0 %v2406_v26 }
  0x88   :  { %721 = vmatprep.subr.bf16.mxu0 %v2410_v27 }
  0x8b   :  { %722 = vmatpush1.bf16.msra.mxu0 %v2418_v29 }
  0x8c   :  { %723 = vmatprep.subr.bf16.mxu0 %v2421_v30 }
  0x8f   :  { %724 = vmatpush1.bf16.msra.mxu0 %v2425_v31 }
  0x90   :  { %725 = vmatprep.subr.bf16.mxu0 %v2429_v32 }
  0x93   :  { %726 = vmatpush1.bf16.msra.mxu0 %v2437_v34 }
  0x94   :  { %727 = vmatprep.subr.bf16.mxu0 %v2440_v35 }
  0x97   :  { %728 = vmatpush1.bf16.msra.mxu0 %v2444_v36 }
  0x98   :  { %820 = vmatprep.subr.bf16.mxu0 %v2379_v18 }
 0x12d   :  { %v315_v59 = vpop.f32.mrb[0].mxu0 }
 0x12e   :  { %v317_v61 = vpop.f32.mrb[1].mxu0  ;;  %v316_v44 = vadd.f32 %v315_v59, %v117_v60  ;;  %v124_v59 = vsub.s32 2, %v2530_v55 }
 0x12f   :  { %v319_v63 = vpop.f32.mrb[2].mxu0  ;;  %v318_v54 = vadd.f32 %v317_v61, %v121_v62 }
 0x130   :  { %v2541_v1 = vadd.f32 %v319_v63, %v117_v60  ;;  %v321_v2 = vpop.f32.mrb[3].mxu0 }
 0x131   :  { %v2543_v3 = vadd.f32 %v321_v2, %v121_v62 }
 0x135   :  { %v325_v4 = vpop.f32.mrb[4].mxu0 }
 0x136   :  { %v2545_v5 = vadd.f32 %v325_v4, %v117_v60  ;;  %v327_v6 = vpop.f32.mrb[5].mxu0 }
 0x137   :  { %v2547_v7 = vadd.f32 %v327_v6, %v121_v62  ;;  %v329_v8 = vpop.f32.mrb[6].mxu0 }
 0x138   :  { %v2549_v9 = vadd.f32 %v329_v8, %v117_v60  ;;  %v331_v10 = vpop.f32.mrb[7].mxu0 }
 0x139   :  { %v2551_v11 = vadd.f32 %v331_v10, %v121_v62 }
 0x13a   :  { %v1790_v61 = vpop.f32.mrb[0].mxu1 }
 0x13d   :  { %v335_v12 = vpop.f32.mrb[8].mxu0 }
 0x13e   :  { %v2553_v13 = vadd.f32 %v335_v12, %v117_v60  ;;  %v337_v14 = vpop.f32.mrb[9].mxu0 }
 0x13f   :  { %v2555_v15 = vadd.f32 %v337_v14, %v121_v62  ;;  %v339_v16 = vpop.f32.mrb[10].mxu0 }
 0x140   :  { %v2557_v17 = vadd.f32 %v339_v16, %v117_v60  ;;  %v341_v23 = vpop.f32.mrb[11].mxu0 }
 0x141   :  { %v2559_v28 = vadd.f32 %v341_v23, %v121_v62 }
 0x145   :  { %v345_v33 = vpop.f32.mrb[12].mxu0 }
 0x146   :  { %v2561_v37 = vadd.f32 %v345_v33, %v117_v60  ;;  %v347_v38 = vpop.f32.mrb[13].mxu0  ;;  %v388_v33 = vpop.f32.mrb[1].mxu1 }
 0x147   :  { %v2563_v39 = vadd.f32 %v347_v38, %v121_v62  ;;  %v349_v40 = vpop.f32.mrb[14].mxu0  ;;  %v1791_v38 = vpop.f32.mrb[2].mxu1 }
 0x148   :  { %v2565_v41 = vadd.f32 %v349_v40, %v117_v60  ;;  %v351_v42 = vpop.f32.mrb[15].mxu0  ;;  %v125_v60 = vrot.slane %v2536_v57, %v124_v59 }
 0x149   :  { %v2567_v43 = vadd.f32 %v351_v42, %v121_v62  ;;  %v391_v42 = vpop.f32.mrb[3].mxu1 }
 0x14a   :  { %v2589_v62 = vadd.f32 %v1790_v61, %v125_v60  ;;  %v2591_v40 = vadd.f32 %v1791_v38, %v125_v60 }
 0x14d   :  { %v592_v56 = vpop.f32.mrb[16].mxu0 }
 0x14e   :  { %v599_v58 = vadd.f32 %v592_v56, %v316_v44  ;;  %v594_v63 = vpop.f32.mrb[17].mxu0  ;;  %v2593_v44 = vadd.f32 %v391_v42, %v125_v60 }
 0x14f   :  { %v606_v2 = vadd.f32 %v594_v63, %v318_v54  ;;  %v596_v4 = vpop.f32.mrb[18].mxu0  ;;  %v1794_v54 = vpop.f32.mrb[4].mxu1 }
 0x150   :  { %v1646_v6 = vmul.f32 -1.442695, %v599_v58  ;;  %v597_v8 = vpop.f32.mrb[19].mxu0  ;;  %v2595_v56 = vadd.f32 %v1794_v54, %v125_v60  ;;  %v404_v58 = vpop.f32.mrb[5].mxu1 }
 0x151   :  { %v2597_v63 = vadd.f32 %v404_v58, %v125_v60  ;;  %v1795_v4 = vpop.f32.mrb[6].mxu1  ;;  %v1647_v8 = vmul.f32 -1.442695, %v606_v2 }
 0x152   :  { %2066 = vpow2.f32 %v1646_v6  ;;  %v2599_v55 = vadd.f32 %v1795_v4, %v125_v60  ;;  %v407_v57 = vpop.f32.mrb[7].mxu1 }
 0x153   :  { %v2601_v6 = vadd.f32 %v407_v57, %v125_v60 }
 0x15c   :  { %v2067_v10 = vpop.eup %2066 }
 0x15d   :  { %v603_v12 = vadd.f32 1.0, %v2067_v10 }
 0x15f   :  { %2068 = vrcp.f32 %v603_v12 }
 0x160   :  { %2070 = vpow2.f32 %v1647_v8 }
 0x169   :  { %v2069_v14 = vpop.eup %2068 }
 0x16a   :  { %v613_v16 = vmul.f32 0.0, %v2069_v14  ;;  %v2071_v10 = vpop.eup %2070  ;;  %v389_v14 = vadd.f32 %v388_v33, %v125_v60  ;;  %v2914_v60 = vmov 0  }
 0x16b   :  { %v610_v12 = vadd.f32 1.0, %v2071_v10 }
 0x16c   :  { %v614_v23 = vpack.c.bf16 %v613_v16, %v613_v16 }
 0x16d   :  { %2072 = vrcp.f32 %v610_v12 }
 0x16e   :  { %1813 = vmatmul.mubr.bf16.vlgmr.msra.gmra.mrb[8].mxu1 %v614_v23 }
 0x16f   :  { %1817 = vmatpush3.bf16.msra.mxu1 %v2472_v45  ;;  %1832 = vmatprep.mubr.msk.bf16.mxu1 %vm2291_vm0, %v2910_v46 }
 0x170   :  { %1818 = vmatprep.subr.bf16.mxu1 %v2910_v46 }
 0x173   :  { %1819 = vmatpush3.bf16.msra.mxu1 %v2481_v47 }
 0x174   :  { %1820 = vmatprep.subr.bf16.mxu1 %v2910_v46 }
 0x177   :  { %1821 = vmatpush3.bf16.msra.mxu1 %v2489_v48  ;;  %v2073_v42 = vpop.eup %2072 }
 0x178   :  { %1822 = vmatprep.subr.bf16.mxu1 %v2910_v46  ;;  %v705_v54 = vsub.f32 1.0, %v2073_v42 }
 0x17b   :  { %1823 = vmatpush3.bf16.msra.mxu1 %v2496_v49 }
 0x17c   :  { %1824 = vmatprep.subr.bf16.mxu1 %v2910_v46 }
 0x17f   :  { %1825 = vmatpush3.bf16.msra.mxu1 %v2503_v50 }
 0x180   :  { %1826 = vmatprep.subr.bf16.mxu1 %v2910_v46 }
 0x183   :  { %1827 = vmatpush3.bf16.msra.mxu1 %v2510_v51 }
 0x184   :  { %1828 = vmatprep.subr.bf16.mxu1 %v2910_v46 }
 0x187   :  { %1829 = vmatpush3.bf16.msra.mxu1 %v2517_v52 }
 0x188   :  { %1830 = vmatprep.subr.bf16.mxu1 %v2910_v46 }
 0x18b   :  { %1831 = vmatpush3.bf16.msra.mxu1 %v2524_v53 }
 0x18c   :  { %1836 = vmatprep.subr.bf16.mxu1 %v2910_v46  ;;  %v706_v46 = vmul.f32 0.0, %v705_v54 }
 0x241   :  { %v697_v16 = vpop.f32.mrb[8].mxu1 }
 0x242   :  { %v703_v23 = vadd.f32 %v697_v16, %v389_v14  ;;  %v1814_v59 = vpop.f32.mrb[9].mxu1 }
 0x243   :  { %v700_v61 = vpop.f32.mrb[10].mxu1 }
 0x244   :  { %2074 = vtanh.f32 %v703_v23  ;;  %v1815_v38 = vpop.f32.mrb[11].mxu1 }
 0x24e   :  { %v2075_v58 = vpop.eup %2074 }
 0x24f   :  { %v707_v4 = vmul.f32 %v2075_v58, %v2073_v42  ;;  %v2915_v42 = vmov 0.0  }
 0x251   :  { %v2603_v0 = vadd.f32 %v707_v4, %v706_v46 }
 0x253   :  { %v712_v2 = vpack.c.bf16 %v2603_v0, %v2603_v0 }
 0x255   :  { %746 = vmatmul.mubr.bf16.vlgmr.msra.gmra.mrb[20].mxu0 %v712_v2 }
 0x256   :  { %821 = vmatpush1.bf16.msra.mxu0 %v2381_v19  ;;  %852 = vmatprep.mubr.bf16.mxu0 %v2914_v60 }
 0x257   :  { %822 = vmatprep.subr.bf16.mxu0 %v2383_v20 }
 0x25a   :  { %823 = vmatpush1.bf16.msra.mxu0 %v2386_v21 }
 0x25b   :  { %824 = vmatprep.subr.bf16.mxu0 %v2388_v22 }
 0x25e   :  { %825 = vmatpush1.bf16.msra.mxu0 %v2398_v24 }
 0x25f   :  { %826 = vmatprep.subr.bf16.mxu0 %v2400_v25 }
 0x262   :  { %827 = vmatpush1.bf16.msra.mxu0 %v2406_v26 }
 0x263   :  { %828 = vmatprep.subr.bf16.mxu0 %v2410_v27 }
 0x266   :  { %829 = vmatpush1.bf16.msra.mxu0 %v2418_v29 }
 0x267   :  { %830 = vmatprep.subr.bf16.mxu0 %v2421_v30 }
 0x26a   :  { %831 = vmatpush1.bf16.msra.mxu0 %v2425_v31 }
 0x26b   :  { %832 = vmatprep.subr.bf16.mxu0 %v2429_v32 }
 0x26e   :  { %833 = vmatpush1.bf16.msra.mxu0 %v2437_v34 }
 0x26f   :  { %834 = vmatprep.subr.bf16.mxu0 %v2440_v35 }
 0x272   :  { %835 = vmatpush1.bf16.msra.mxu0 %v2444_v36 }
 0x273   :  { %927 = vmatprep.subr.bf16.mxu0 %v2379_v18 }
 0x328   :  { %v747_v46 = vpop.f32.mrb[20].mxu0 }
 0x329   :  { %v754_v33 = vadd.f32 %v747_v46, %v2541_v1  ;;  %v749_v57 = vpop.f32.mrb[21].mxu0 }
 0x32a   :  { %v761_v8 = vadd.f32 %v749_v57, %v2543_v3  ;;  %v751_v10 = vpop.f32.mrb[22].mxu0 }
 0x32b   :  { %v1656_v12 = vmul.f32 -1.442695, %v754_v33  ;;  %v752_v14 = vpop.f32.mrb[23].mxu0 }
 0x32c   :  { %v1657_v1 = vmul.f32 -1.442695, %v761_v8 }
 0x32d   :  { %2076 = vpow2.f32 %v1656_v12 }
 0x337   :  { %v2077_v16 = vpop.eup %2076 }
 0x338   :  { %v758_v23 = vadd.f32 1.0, %v2077_v16 }
 0x33a   :  { %2078 = vrcp.f32 %v758_v23 }
 0x33b   :  { %2080 = vpow2.f32 %v1657_v1 }
 0x344   :  { %v2079_v59 = vpop.eup %2078 }
 0x345   :  { %v768_v61 = vmul.f32 %v2079_v59, %v2603_v0  ;;  %v2081_v3 = vpop.eup %2080 }
 0x346   :  { %v765_v54 = vadd.f32 1.0, %v2081_v3 }
 0x347   :  { %v769_v38 = vpack.c.bf16 %v768_v61, %v768_v61 }
 0x348   :  { %2082 = vrcp.f32 %v765_v54 }
 0x349   :  { %1833 = vmatmul.mubr.bf16.vlgmr.msra.gmra.mrb[12].mxu1 %v769_v38 }
 0x34a   :  { %1837 = vmatpush3.bf16.msra.mxu1 %v2472_v45  ;;  %1852 = vmatprep.mubr.msk.bf16.mxu1 %vm2291_vm0, %v2915_v42 }
 0x34b   :  { %1838 = vmatprep.subr.bf16.mxu1 %v2915_v42 }
 0x34e   :  { %1839 = vmatpush3.bf16.msra.mxu1 %v2481_v47 }
 0x34f   :  { %1840 = vmatprep.subr.bf16.mxu1 %v2915_v42 }
 0x352   :  { %1841 = vmatpush3.bf16.msra.mxu1 %v2489_v48  ;;  %v2083_v57 = vpop.eup %2082 }
 0x353   :  { %1842 = vmatprep.subr.bf16.mxu1 %v2915_v42  ;;  %v812_v10 = vsub.f32 1.0, %v2083_v57 }
 0x355   :  { %v813_v16 = vmul.f32 %v812_v10, %v2603_v0 }
 0x356   :  { %1843 = vmatpush3.bf16.msra.mxu1 %v2496_v49 }
 0x357   :  { %1844 = vmatprep.subr.bf16.mxu1 %v2915_v42 }
 0x35a   :  { %1845 = vmatpush3.bf16.msra.mxu1 %v2503_v50 }
 0x35b   :  { %1846 = vmatprep.subr.bf16.mxu1 %v2915_v42 }
 0x35e   :  { %1847 = vmatpush3.bf16.msra.mxu1 %v2510_v51 }
 0x35f   :  { %1848 = vmatprep.subr.bf16.mxu1 %v2915_v42 }
 0x362   :  { %1849 = vmatpush3.bf16.msra.mxu1 %v2517_v52 }
 0x363   :  { %1850 = vmatprep.subr.bf16.mxu1 %v2915_v42 }
 0x366   :  { %1851 = vmatpush3.bf16.msra.mxu1 %v2524_v53 }
 0x367   :  { %1856 = vmatprep.subr.bf16.mxu1 %v2915_v42 }
 0x41c   :  { %v804_v58 = vpop.f32.mrb[12].mxu1 }
 0x41d   :  { %v810_v4 = vadd.f32 %v804_v58, %v2593_v44  ;;  %v1834_v2 = vpop.f32.mrb[13].mxu1 }
 0x41e   :  { %v807_v46 = vpop.f32.mrb[14].mxu1 }
 0x41f   :  { %2084 = vtanh.f32 %v810_v4  ;;  %v1835_v33 = vpop.f32.mrb[15].mxu1 }
 0x429   :  { %v2085_v12 = vpop.eup %2084 }
 0x42a   :  { %v814_v14 = vmul.f32 %v2085_v12, %v2083_v57 }
 0x42c   :  { %v2647_v23 = vadd.f32 %v814_v14, %v813_v16 }
 0x42e   :  { %v819_v8 = vpack.c.bf16 %v2647_v23, %v2647_v23 }
 0x430   :  { %853 = vmatmul.mubr.bf16.vlgmr.msra.gmra.mrb[24].mxu0 %v819_v8 }
 0x431   :  { %928 = vmatpush1.bf16.msra.mxu0 %v2381_v19  ;;  %959 = vmatprep.mubr.bf16.mxu0 %v2914_v60 }
 0x432   :  { %929 = vmatprep.subr.bf16.mxu0 %v2383_v20 }
 0x435   :  { %930 = vmatpush1.bf16.msra.mxu0 %v2386_v21 }
 0x436   :  { %931 = vmatprep.subr.bf16.mxu0 %v2388_v22 }
 0x439   :  { %932 = vmatpush1.bf16.msra.mxu0 %v2398_v24 }
 0x43a   :  { %933 = vmatprep.subr.bf16.mxu0 %v2400_v25 }
 0x43d   :  { %934 = vmatpush1.bf16.msra.mxu0 %v2406_v26 }
 0x43e   :  { %935 = vmatprep.subr.bf16.mxu0 %v2410_v27 }
 0x441   :  { %936 = vmatpush1.bf16.msra.mxu0 %v2418_v29 }
 0x442   :  { %937 = vmatprep.subr.bf16.mxu0 %v2421_v30 }
 0x445   :  { %938 = vmatpush1.bf16.msra.mxu0 %v2425_v31 }
 0x446   :  { %939 = vmatprep.subr.bf16.mxu0 %v2429_v32 }
 0x449   :  { %940 = vmatpush1.bf16.msra.mxu0 %v2437_v34 }
 0x44a   :  { %941 = vmatprep.subr.bf16.mxu0 %v2440_v35 }
 0x44d   :  { %942 = vmatpush1.bf16.msra.mxu0 %v2444_v36 }
 0x44e   :  { %1034 = vmatprep.subr.bf16.mxu0 %v2379_v18 }
 0x503   :  { %v854_v0 = vpop.f32.mrb[24].mxu0 }
 0x504   :  { %v861_v44 = vadd.f32 %v854_v0, %v2545_v5  ;;  %v856_v59 = vpop.f32.mrb[25].mxu0 }
 0x505   :  { %v868_v61 = vadd.f32 %v856_v59, %v2547_v7  ;;  %v858_v38 = vpop.f32.mrb[26].mxu0 }
 0x506   :  { %v1658_v1 = vmul.f32 -1.442695, %v861_v44  ;;  %v859_v3 = vpop.f32.mrb[27].mxu0 }
 0x507   :  { %v1659_v5 = vmul.f32 -1.442695, %v868_v61 }
 0x508   :  { %2086 = vpow2.f32 %v1658_v1 }
 0x512   :  { %v2087_v54 = vpop.eup %2086 }
 0x513   :  { %v865_v58 = vadd.f32 1.0, %v2087_v54 }
 0x515   :  { %2088 = vrcp.f32 %v865_v58 }
 0x516   :  { %2090 = vpow2.f32 %v1659_v5 }
 0x51f   :  { %v2089_v4 = vpop.eup %2088 }
 0x520   :  { %v875_v2 = vmul.f32 %v2089_v4, %v2647_v23  ;;  %v2091_v7 = vpop.eup %2090 }
 0x521   :  { %v872_v33 = vadd.f32 1.0, %v2091_v7 }
 0x522   :  { %v876_v46 = vpack.c.bf16 %v875_v2, %v875_v2 }
 0x523   :  { %2092 = vrcp.f32 %v872_v33 }
 0x524   :  { %1853 = vmatmul.mubr.bf16.vlgmr.msra.gmra.mrb[16].mxu1 %v876_v46 }
 0x525   :  { %1857 = vmatpush3.bf16.msra.mxu1 %v2472_v45  ;;  %1872 = vmatprep.mubr.msk.bf16.mxu1 %vm2291_vm0, %v2915_v42 }
 0x526   :  { %1858 = vmatprep.subr.bf16.mxu1 %v2915_v42 }
 0x529   :  { %1859 = vmatpush3.bf16.msra.mxu1 %v2481_v47 }
 0x52a   :  { %1860 = vmatprep.subr.bf16.mxu1 %v2915_v42 }
 0x52d   :  { %1861 = vmatpush3.bf16.msra.mxu1 %v2489_v48  ;;  %v2093_v8 = vpop.eup %2092 }
 0x52e   :  { %1862 = vmatprep.subr.bf16.mxu1 %v2915_v42  ;;  %v919_v0 = vsub.f32 1.0, %v2093_v8 }
 0x530   :  { %v920_v38 = vmul.f32 %v919_v0, %v2647_v23 }
 0x531   :  { %1863 = vmatpush3.bf16.msra.mxu1 %v2496_v49 }
 0x532   :  { %1864 = vmatprep.subr.bf16.mxu1 %v2915_v42 }
 0x535   :  { %1865 = vmatpush3.bf16.msra.mxu1 %v2503_v50 }
 0x536   :  { %1866 = vmatprep.subr.bf16.mxu1 %v2915_v42 }
 0x539   :  { %1867 = vmatpush3.bf16.msra.mxu1 %v2510_v51 }
 0x53a   :  { %1868 = vmatprep.subr.bf16.mxu1 %v2915_v42 }
 0x53d   :  { %1869 = vmatpush3.bf16.msra.mxu1 %v2517_v52 }
 0x53e   :  { %1870 = vmatprep.subr.bf16.mxu1 %v2915_v42 }
 0x541   :  { %1871 = vmatpush3.bf16.msra.mxu1 %v2524_v53 }
 0x542   :  { %1876 = vmatprep.subr.bf16.mxu1 %v2915_v42 }
 0x5f7   :  { %v911_v57 = vpop.f32.mrb[16].mxu1 }
 0x5f8   :  { %v917_v10 = vadd.f32 %v911_v57, %v2589_v62  ;;  %v1854_v12 = vpop.f32.mrb[17].mxu1 }
 0x5f9   :  { %v914_v14 = vpop.f32.mrb[18].mxu1 }
 0x5fa   :  { %2094 = vtanh.f32 %v917_v10  ;;  %v1855_v16 = vpop.f32.mrb[19].mxu1 }
 0x604   :  { %v2095_v44 = vpop.eup %2094 }
 0x605   :  { %v921_v59 = vmul.f32 %v2095_v44, %v2093_v8 }
 0x607   :  { %v2691_v1 = vadd.f32 %v921_v59, %v920_v38 }
 0x609   :  { %v926_v61 = vpack.c.bf16 %v2691_v1, %v2691_v1 }
 0x60b   :  { %960 = vmatmul.mubr.bf16.vlgmr.msra.gmra.mrb[28].mxu0 %v926_v61 }
 0x60c   :  { %1035 = vmatpush1.bf16.msra.mxu0 %v2381_v19  ;;  %1066 = vmatprep.mubr.bf16.mxu0 %v2914_v60 }
 0x60d   :  { %1036 = vmatprep.subr.bf16.mxu0 %v2383_v20 }
 0x610   :  { %1037 = vmatpush1.bf16.msra.mxu0 %v2386_v21 }
 0x611   :  { %1038 = vmatprep.subr.bf16.mxu0 %v2388_v22 }
 0x614   :  { %1039 = vmatpush1.bf16.msra.mxu0 %v2398_v24 }
 0x615   :  { %1040 = vmatprep.subr.bf16.mxu0 %v2400_v25 }
 0x618   :  { %1041 = vmatpush1.bf16.msra.mxu0 %v2406_v26 }
 0x619   :  { %1042 = vmatprep.subr.bf16.mxu0 %v2410_v27 }
 0x61c   :  { %1043 = vmatpush1.bf16.msra.mxu0 %v2418_v29 }
 0x61d   :  { %1044 = vmatprep.subr.bf16.mxu0 %v2421_v30 }
 0x620   :  { %1045 = vmatpush1.bf16.msra.mxu0 %v2425_v31 }
 0x621   :  { %1046 = vmatprep.subr.bf16.mxu0 %v2429_v32 }
 0x624   :  { %1047 = vmatpush1.bf16.msra.mxu0 %v2437_v34 }
 0x625   :  { %1048 = vmatprep.subr.bf16.mxu0 %v2440_v35 }
 0x628   :  { %1049 = vmatpush1.bf16.msra.mxu0 %v2444_v36 }
 0x629   :  { %1141 = vmatprep.subr.bf16.mxu0 %v2379_v18 }
 0x6de   :  { %v961_v62 = vpop.f32.mrb[28].mxu0 }
 0x6df   :  { %v968_v23 = vadd.f32 %v961_v62, %v2549_v9  ;;  %v963_v3 = vpop.f32.mrb[29].mxu0 }
 0x6e0   :  { %v975_v54 = vadd.f32 %v963_v3, %v2551_v11  ;;  %v965_v58 = vpop.f32.mrb[30].mxu0 }
 0x6e1   :  { %v1660_v4 = vmul.f32 -1.442695, %v968_v23  ;;  %v966_v2 = vpop.f32.mrb[31].mxu0 }
 0x6e2   :  { %v1661_v9 = vmul.f32 -1.442695, %v975_v54 }
 0x6e3   :  { %2096 = vpow2.f32 %v1660_v4 }
 0x6ed   :  { %v2097_v46 = vpop.eup %2096 }
 0x6ee   :  { %v972_v5 = vadd.f32 1.0, %v2097_v46 }
 0x6f0   :  { %2098 = vrcp.f32 %v972_v5 }
 0x6f1   :  { %2100 = vpow2.f32 %v1661_v9 }
 0x6fa   :  { %v2099_v7 = vpop.eup %2098 }
 0x6fb   :  { %v982_v33 = vmul.f32 %v2099_v7, %v2691_v1  ;;  %v2101_v11 = vpop.eup %2100 }
 0x6fc   :  { %v979_v10 = vadd.f32 1.0, %v2101_v11 }
 0x6fd   :  { %v983_v57 = vpack.c.bf16 %v982_v33, %v982_v33 }
 0x6fe   :  { %2102 = vrcp.f32 %v979_v10 }
 0x6ff   :  { %1873 = vmatmul.mubr.bf16.vlgmr.msra.gmra.mrb[20].mxu1 %v983_v57 }
 0x700   :  { %1877 = vmatpush3.bf16.msra.mxu1 %v2472_v45  ;;  %1892 = vmatprep.mubr.msk.bf16.mxu1 %vm2291_vm0, %v2915_v42 }
 0x701   :  { %1878 = vmatprep.subr.bf16.mxu1 %v2915_v42 }
 0x704   :  { %1879 = vmatpush3.bf16.msra.mxu1 %v2481_v47 }
 0x705   :  { %1880 = vmatprep.subr.bf16.mxu1 %v2915_v42 }
 0x708   :  { %1881 = vmatpush3.bf16.msra.mxu1 %v2489_v48  ;;  %v2103_v44 = vpop.eup %2102 }
 0x709   :  { %1882 = vmatprep.subr.bf16.mxu1 %v2915_v42  ;;  %v1026_v59 = vsub.f32 1.0, %v2103_v44 }
 0x70b   :  { %v1027_v62 = vmul.f32 %v1026_v59, %v2691_v1  ;;  %v2783_v59 = vld [vmem:[#allocation6] ss:$8 sps:$4 sm:$0xff]  }
 0x70c   :  { %1883 = vmatpush3.bf16.msra.mxu1 %v2496_v49 }
 0x70d   :  { %1884 = vmatprep.subr.bf16.mxu1 %v2915_v42 }
 0x710   :  { %1885 = vmatpush3.bf16.msra.mxu1 %v2503_v50 }
 0x711   :  { %1886 = vmatprep.subr.bf16.mxu1 %v2915_v42 }
 0x714   :  { %1887 = vmatpush3.bf16.msra.mxu1 %v2510_v51 }
 0x715   :  { %1888 = vmatprep.subr.bf16.mxu1 %v2915_v42 }
 0x718   :  { %1889 = vmatpush3.bf16.msra.mxu1 %v2517_v52 }
 0x719   :  { %1890 = vmatprep.subr.bf16.mxu1 %v2915_v42 }
 0x71c   :  { %1891 = vmatpush3.bf16.msra.mxu1 %v2524_v53 }
 0x71d   :  { %1896 = vmatprep.subr.bf16.mxu1 %v2915_v42 }
 0x7d2   :  { %v1018_v12 = vpop.f32.mrb[20].mxu1 }
 0x7d3   :  { %v1024_v14 = vadd.f32 %v1018_v12, %v2591_v40  ;;  %v1874_v16 = vpop.f32.mrb[21].mxu1 }
 0x7d4   :  { %v1021_v8 = vpop.f32.mrb[22].mxu1 }
 0x7d5   :  { %2104 = vtanh.f32 %v1024_v14  ;;  %v1875_v0 = vpop.f32.mrb[23].mxu1 }
 0x7df   :  { %v2105_v38 = vpop.eup %2104 }
 0x7e0   :  { %v1028_v61 = vmul.f32 %v2105_v38, %v2103_v44  ;;  %v2790_v38 = vld [vmem:[#allocation6 + $0x10] ss:$8 sps:$4 sm:$0xff]  }
 0x7e2   :  { %v2735_v23 = vadd.f32 %v1028_v61, %v1027_v62  ;;  %v2793_v61 = vld [vmem:[#allocation6 + $0x24] ss:$8 sps:$4 sm:$0xff]  }
 0x7e4   :  { %v1033_v3 = vpack.c.bf16 %v2735_v23, %v2735_v23 }
 0x7e6   :  { %1067 = vmatmul.mubr.bf16.vlgmr.msra.gmra.mrb[32].mxu0 %v1033_v3 }
 0x7e7   :  { %1142 = vmatpush1.bf16.msra.mxu0 %v2381_v19  ;;  %1173 = vmatprep.mubr.bf16.mxu0 %v2914_v60 }
 0x7e8   :  { %1143 = vmatprep.subr.bf16.mxu0 %v2383_v20 }
 0x7eb   :  { %1144 = vmatpush1.bf16.msra.mxu0 %v2386_v21 }
 0x7ec   :  { %1145 = vmatprep.subr.bf16.mxu0 %v2388_v22 }
 0x7ef   :  { %1146 = vmatpush1.bf16.msra.mxu0 %v2398_v24 }
 0x7f0   :  { %1147 = vmatprep.subr.bf16.mxu0 %v2400_v25 }
 0x7f3   :  { %1148 = vmatpush1.bf16.msra.mxu0 %v2406_v26 }
 0x7f4   :  { %1149 = vmatprep.subr.bf16.mxu0 %v2410_v27 }
 0x7f7   :  { %1150 = vmatpush1.bf16.msra.mxu0 %v2418_v29 }
 0x7f8   :  { %1151 = vmatprep.subr.bf16.mxu0 %v2421_v30 }
 0x7fb   :  { %1152 = vmatpush1.bf16.msra.mxu0 %v2425_v31 }
 0x7fc   :  { %1153 = vmatprep.subr.bf16.mxu0 %v2429_v32 }
 0x7ff   :  { %1154 = vmatpush1.bf16.msra.mxu0 %v2437_v34 }
 0x800   :  { %1155 = vmatprep.subr.bf16.mxu0 %v2440_v35 }
 0x803   :  { %1156 = vmatpush1.bf16.msra.mxu0 %v2444_v36 }
 0x804   :  { %1248 = vmatprep.subr.bf16.mxu0 %v2379_v18 }
 0x8b9   :  { %v1068_v19 = vpop.f32.mrb[32].mxu0 }
 0x8ba   :  { %v1075_v20 = vadd.f32 %v1068_v19, %v2553_v13  ;;  %v1070_v21 = vpop.f32.mrb[33].mxu0 }
 0x8bb   :  { %v1082_v22 = vadd.f32 %v1070_v21, %v2555_v15  ;;  %v1072_v40 = vpop.f32.mrb[34].mxu0 }
 0x8bc   :  { %v1662_v1 = vmul.f32 -1.442695, %v1075_v20  ;;  %v1073_v54 = vpop.f32.mrb[35].mxu0 }
 0x8bd   :  { %v1663_v18 = vmul.f32 -1.442695, %v1082_v22 }
 0x8be   :  { %2106 = vpow2.f32 %v1662_v1 }
 0x8c8   :  { %v2107_v58 = vpop.eup %2106 }
 0x8c9   :  { %v1079_v4 = vadd.f32 1.0, %v2107_v58 }
 0x8cb   :  { %2108 = vrcp.f32 %v1079_v4 }
 0x8cc   :  { %2110 = vpow2.f32 %v1663_v18  ;;  %v2152_v18 = vld [vmem:[#allocation6 + $0x34] ss:$8 sps:$4 sm:$0xff]  }
 0x8d5   :  { %v2109_v2 = vpop.eup %2108 }
 0x8d6   :  { %v1089_v46 = vmul.f32 %v2109_v2, %v2735_v23  ;;  %v2111_v13 = vpop.eup %2110 }
 0x8d7   :  { %v1086_v15 = vadd.f32 1.0, %v2111_v13  ;;  %v2153_v13 = vld [vmem:[#allocation6 + $0x30] ss:$8 sps:$4 sm:$0xff]  }
 0x8d8   :  { %v1090_v5 = vpack.c.bf16 %v1089_v46, %v1089_v46 }
 0x8d9   :  { %2112 = vrcp.f32 %v1086_v15  ;;  %v2154_v15 = vld [vmem:[#allocation6 + $0x44] ss:$8 sps:$4 sm:$0xff]  }
 0x8da   :  { %1893 = vmatmul.mubr.bf16.vlgmr.msra.gmra.mrb[24].mxu1 %v1090_v5 }
 0x8db   :  { %1897 = vmatpush3.bf16.msra.mxu1 %v2472_v45  ;;  %1912 = vmatprep.mubr.msk.bf16.mxu1 %vm2291_vm0, %v2915_v42 }
 0x8dc   :  { %1898 = vmatprep.subr.bf16.mxu1 %v2915_v42 }
 0x8df   :  { %1899 = vmatpush3.bf16.msra.mxu1 %v2481_v47 }
 0x8e0   :  { %1900 = vmatprep.subr.bf16.mxu1 %v2915_v42 }
 0x8e3   :  { %1901 = vmatpush3.bf16.msra.mxu1 %v2489_v48  ;;  %v2113_v10 = vpop.eup %2112 }
 0x8e4   :  { %1902 = vmatprep.subr.bf16.mxu1 %v2915_v42  ;;  %v1133_v12 = vsub.f32 1.0, %v2113_v10 }
 0x8e6   :  { %v1134_v8 = vmul.f32 %v1133_v12, %v2735_v23 }
 0x8e7   :  { %1903 = vmatpush3.bf16.msra.mxu1 %v2496_v49 }
 0x8e8   :  { %1904 = vmatprep.subr.bf16.mxu1 %v2915_v42 }
 0x8eb   :  { %1905 = vmatpush3.bf16.msra.mxu1 %v2503_v50 }
 0x8ec   :  { %1906 = vmatprep.subr.bf16.mxu1 %v2915_v42 }
 0x8ef   :  { %1907 = vmatpush3.bf16.msra.mxu1 %v2510_v51 }
 0x8f0   :  { %1908 = vmatprep.subr.bf16.mxu1 %v2915_v42 }
 0x8f3   :  { %1909 = vmatpush3.bf16.msra.mxu1 %v2517_v52 }
 0x8f4   :  { %1910 = vmatprep.subr.bf16.mxu1 %v2915_v42 }
 0x8f7   :  { %1911 = vmatpush3.bf16.msra.mxu1 %v2524_v53 }
 0x8f8   :  { %1916 = vmatprep.subr.bf16.mxu1 %v2915_v42 }
 0x9ad   :  { %v1125_v7 = vpop.f32.mrb[24].mxu1 }
 0x9ae   :  { %v1131_v33 = vadd.f32 %v1125_v7, %v2597_v63  ;;  %v1894_v57 = vpop.f32.mrb[25].mxu1  ;;  %v2787_v63 = vld [vmem:[#allocation6 + $0x14] ss:$8 sps:$4 sm:$0xff]   ;;  %v2155_v7 = vld [vmem:[#allocation6 + $0x40] ss:$8 sps:$4 sm:$0xff]  }
 0x9af   :  { %v1128_v9 = vpop.f32.mrb[26].mxu1  ;;  %v2157_v57 = vld [vmem:[#allocation6 + $0x50] ss:$8 sps:$4 sm:$0xff]  }
 0x9b0   :  { %2114 = vtanh.f32 %v1131_v33  ;;  %v1895_v11 = vpop.f32.mrb[27].mxu1  ;;  %v2156_v33 = vld [vmem:[#allocation6 + $0x54] ss:$8 sps:$4 sm:$0xff]   ;;  %v2159_v9 = vld [vmem:[#allocation6 + $0x60] ss:$8 sps:$4 sm:$0xff]  }
 0x9b1   :  { %v2160_v11 = vld [vmem:[#allocation6 + $0x74] ss:$8 sps:$4 sm:$0xff]  }
 0x9ba   :  { %v2115_v14 = vpop.eup %2114 }
 0x9bb   :  { %v1135_v16 = vmul.f32 %v2115_v14, %v2113_v10  ;;  %v2161_v10 = vld [vmem:[#allocation6 + $0x70] ss:$8 sps:$4 sm:$0xff]  }
 0x9bd   :  { %v2779_v0 = vadd.f32 %v1135_v16, %v1134_v8 }
 0x9bf   :  { %v1140_v44 = vpack.c.bf16 %v2779_v0, %v2779_v0 }
 0x9c1   :  { %1174 = vmatmul.mubr.bf16.vlgmr.msra.gmra.mrb[36].mxu0 %v1140_v44 }
 0x9c2   :  { %1249 = vmatpush1.bf16.msra.mxu0 %v2783_v59  ;;  %1280 = vmatprep.mubr.bf16.mxu0 %v2914_v60 }
 0x9c3   :  { %1250 = vmatprep.subr.bf16.mxu0 %v2787_v63 }
 0x9c6   :  { %1251 = vmatpush1.bf16.msra.mxu0 %v2790_v38 }
 0x9c7   :  { %1252 = vmatprep.subr.bf16.mxu0 %v2793_v61 }
 0x9ca   :  { %1253 = vmatpush1.bf16.msra.mxu0 %v2398_v24  ;;  %v2150_v24 = vld [vmem:[#allocation6 + $0x4] ss:$8 sps:$4 sm:$0xff]  }
 0x9cb   :  { %1254 = vmatprep.subr.bf16.mxu0 %v2400_v25 }
 0x9ce   :  { %1255 = vmatpush1.bf16.msra.mxu0 %v2406_v26 }
 0x9cf   :  { %1256 = vmatprep.subr.bf16.mxu0 %v2410_v27 }
 0x9d2   :  { %1257 = vmatpush1.bf16.msra.mxu0 %v2418_v29 }
 0x9d3   :  { %1258 = vmatprep.subr.bf16.mxu0 %v2421_v30 }
 0x9d6   :  { %1259 = vmatpush1.bf16.msra.mxu0 %v2425_v31 }
 0x9d7   :  { %1260 = vmatprep.subr.bf16.mxu0 %v2429_v32 }
 0x9da   :  { %1261 = vmatpush1.bf16.msra.mxu0 %v2437_v34 }
 0x9db   :  { %1262 = vmatprep.subr.bf16.mxu0 %v2440_v35 }
 0x9de   :  { %1263 = vmatpush1.bf16.msra.mxu0 %v2444_v36 }
 0x9df   :  { %1355 = vmatprep.subr.bf16.mxu0 %v2150_v24 }
 0xa94   :  { %v1175_v25 = vpop.f32.mrb[36].mxu0 }
 0xa95   :  { %v1182_v26 = vadd.f32 %v1175_v25, %v2557_v17  ;;  %v1177_v27 = vpop.f32.mrb[37].mxu0 }
 0xa96   :  { %v1189_v29 = vadd.f32 %v1177_v27, %v2559_v28  ;;  %v1179_v62 = vpop.f32.mrb[38].mxu0 }
 0xa97   :  { %v1664_v30 = vmul.f32 -1.442695, %v1182_v26  ;;  %v1180_v23 = vpop.f32.mrb[39].mxu0 }
 0xa98   :  { %v1665_v36 = vmul.f32 -1.442695, %v1189_v29  ;;  %v2058_v23 = vld [vmem:[#allocation8] sm:$0xff]  }
 0xa99   :  { %2116 = vpow2.f32 %v1664_v30 }
 0xaa3   :  { %v2117_v31 = vpop.eup %2116 }
 0xaa4   :  { %v1186_v32 = vadd.f32 1.0, %v2117_v31  ;;  %v2059_v31 = vld [vmem:[#allocation8 + $0x8] sm:$0xff]  }
 0xaa6   :  { %2118 = vrcp.f32 %v1186_v32 }
 0xaa7   :  { %2120 = vpow2.f32 %v1665_v36 }
 0xab0   :  { %v2119_v34 = vpop.eup %2118 }
 0xab1   :  { %v1196_v35 = vmul.f32 %v2119_v34, %v2779_v0  ;;  %v2121_v17 = vpop.eup %2120 }
 0xab2   :  { %v1193_v28 = vadd.f32 1.0, %v2121_v17 }
 0xab3   :  { %v1197_v3 = vpack.c.bf16 %v1196_v35, %v1196_v35 }
 0xab4   :  { %2122 = vrcp.f32 %v1193_v28 }
 0xab5   :  { %1913 = vmatmul.mubr.bf16.vlgmr.msra.gmra.mrb[28].mxu1 %v1197_v3 }
 0xab6   :  { %1917 = vmatpush3.bf16.msra.mxu1 %v2472_v45  ;;  %1932 = vmatprep.mubr.msk.bf16.mxu1 %vm2291_vm0, %v2915_v42 }
 0xab7   :  { %1918 = vmatprep.subr.bf16.mxu1 %v2915_v42 }
 0xaba   :  { %1919 = vmatpush3.bf16.msra.mxu1 %v2481_v47 }
 0xabb   :  { %1920 = vmatprep.subr.bf16.mxu1 %v2915_v42 }
 0xabe   :  { %1921 = vmatpush3.bf16.msra.mxu1 %v2489_v48  ;;  %v2123_v1 = vpop.eup %2122 }
 0xabf   :  { %1922 = vmatprep.subr.bf16.mxu1 %v2915_v42  ;;  %v1240_v54 = vsub.f32 1.0, %v2123_v1 }
 0xac1   :  { %v1241_v2 = vmul.f32 %v1240_v54, %v2779_v0  ;;  %v2062_v54 = vld [vmem:[#allocation8 + $0x20] sm:$0xff]  }
 0xac2   :  { %1923 = vmatpush3.bf16.msra.mxu1 %v2496_v49 }
 0xac3   :  { %1924 = vmatprep.subr.bf16.mxu1 %v2915_v42 }
 0xac6   :  { %1925 = vmatpush3.bf16.msra.mxu1 %v2503_v50 }
 0xac7   :  { %1926 = vmatprep.subr.bf16.mxu1 %v2915_v42 }
 0xaca   :  { %1927 = vmatpush3.bf16.msra.mxu1 %v2510_v51 }
 0xacb   :  { %1928 = vmatprep.subr.bf16.mxu1 %v2915_v42 }
 0xace   :  { %1929 = vmatpush3.bf16.msra.mxu1 %v2517_v52 }
 0xacf   :  { %1930 = vmatprep.subr.bf16.mxu1 %v2915_v42 }
 0xad2   :  { %1931 = vmatpush3.bf16.msra.mxu1 %v2524_v53 }
 0xad3   :  { %1936 = vmatprep.subr.bf16.mxu1 %v2915_v42 }
 0xb88   :  { %v1232_v19 = vpop.f32.mrb[28].mxu1 }
 0xb89   :  { %v1238_v20 = vadd.f32 %v1232_v19, %v2601_v6  ;;  %v1914_v21 = vpop.f32.mrb[29].mxu1  ;;  %v2151_v6 = vld [vmem:[#allocation6 + $0x20] ss:$8 sps:$4 sm:$0xff]  }
 0xb8a   :  { %v1235_v22 = vpop.f32.mrb[30].mxu1 }
 0xb8b   :  { %2124 = vtanh.f32 %v1238_v20  ;;  %v1915_v40 = vpop.f32.mrb[31].mxu1 }
 0xb95   :  { %v2125_v58 = vpop.eup %2124 }
 0xb96   :  { %v1242_v4 = vmul.f32 %v2125_v58, %v2123_v1  ;;  %v2061_v1 = vld [vmem:[#allocation8 + $0x18] sm:$0xff]  }
 0xb97   :  { %v2065_v58 = vld [vmem:[#allocation8 + $0x38] sm:$0xff]  }
 0xb98   :  { %v2830_v46 = vadd.f32 %v1242_v4, %v1241_v2 }
 0xb9a   :  { %v1247_v5 = vpack.c.bf16 %v2830_v46, %v2830_v46 }
 0xb9c   :  { %1281 = vmatmul.mubr.bf16.vlgmr.msra.gmra.mrb[40].mxu0 %v1247_v5 }
 0xb9d   :  { %1356 = vmatpush1.bf16.msra.mxu0 %v2783_v59  ;;  %1387 = vmatprep.mubr.bf16.mxu0 %v2914_v60  ;;  %v2158_v60 = vld [vmem:[#allocation6 + $0x64] ss:$8 sps:$4 sm:$0xff]  }
 0xb9e   :  { %1357 = vmatprep.subr.bf16.mxu0 %v2787_v63 }
 0xba1   :  { %1358 = vmatpush1.bf16.msra.mxu0 %v2790_v38 }
 0xba2   :  { %1359 = vmatprep.subr.bf16.mxu0 %v2793_v61 }
 0xba5   :  { %1360 = vmatpush1.bf16.msra.mxu0 %v2151_v6 }
 0xba6   :  { %1361 = vmatprep.subr.bf16.mxu0 %v2152_v18 }
 0xba9   :  { %1362 = vmatpush1.bf16.msra.mxu0 %v2153_v13 }
 0xbaa   :  { %1363 = vmatprep.subr.bf16.mxu0 %v2154_v15 }
 0xbad   :  { %1364 = vmatpush1.bf16.msra.mxu0 %v2155_v7 }
 0xbae   :  { %1365 = vmatprep.subr.bf16.mxu0 %v2156_v33 }
 0xbb1   :  { %1366 = vmatpush1.bf16.msra.mxu0 %v2157_v57 }
 0xbb2   :  { %1367 = vmatprep.subr.bf16.mxu0 %v2158_v60 }
 0xbb5   :  { %1368 = vmatpush1.bf16.msra.mxu0 %v2159_v9 }
 0xbb6   :  { %1369 = vmatprep.subr.bf16.mxu0 %v2160_v11 }
 0xbb9   :  { %1370 = vmatpush1.bf16.msra.mxu0 %v2161_v10 }
 0xbba   :  { %1956 = vmatprep.subr.bf16.mxu0 %v2915_v42 }
 0xc6f   :  { %v1282_v12 = vpop.f32.mrb[40].mxu0 }
 0xc70   :  { %v1289_v14 = vadd.f32 %v1282_v12, %v2561_v37  ;;  %v1284_v16 = vpop.f32.mrb[41].mxu0 }
 0xc71   :  { %v1296_v8 = vadd.f32 %v1284_v16, %v2563_v39  ;;  %v1286_v0 = vpop.f32.mrb[42].mxu0 }
 0xc72   :  { %v1666_v44 = vmul.f32 -1.442695, %v1289_v14  ;;  %v1287_v59 = vpop.f32.mrb[43].mxu0 }
 0xc74   :  { %2126 = vpow2.f32 %v1666_v44 }
 0xc7e   :  { %v2127_v63 = vpop.eup %2126 }
 0xc7f   :  { %v1293_v38 = vadd.f32 1.0, %v2127_v63 }
 0xc81   :  { %2128 = vrcp.f32 %v1293_v38 }
 0xc8b   :  { %v2129_v61 = vpop.eup %2128 }
 0xc8c   :  { %v1303_v24 = vmul.f32 %v2129_v61, %v2830_v46 }
 0xc8e   :  { %v1304_v25 = vpack.c.bf16 %v1303_v24, %v1303_v24 }
 0xc90   :  { %1933 = vmatmul.mubr.bf16.vlgmr.msra.gmra.mrb[32].mxu1 %v1304_v25 }
 0xc91   :  { %1937 = vmatpush3.bf16.msra.mxu1 %v2472_v45  ;;  %1952 = vmatprep.mubr.msk.bf16.mxu1 %vm2291_vm0, %v2915_v42  ;;  %v1667_v45 = vmul.f32 -1.442695, %v1296_v8 }
 0xc92   :  { %1938 = vmatprep.subr.bf16.mxu1 %v2915_v42 }
 0xc93   :  { %2130 = vpow2.f32 %v1667_v45 }
 0xc95   :  { %1939 = vmatpush3.bf16.msra.mxu1 %v2481_v47 }
 0xc96   :  { %1940 = vmatprep.subr.bf16.mxu1 %v2915_v42 }
 0xc99   :  { %1941 = vmatpush3.bf16.msra.mxu1 %v2489_v48 }
 0xc9a   :  { %1942 = vmatprep.subr.bf16.mxu1 %v2915_v42 }
 0xc9d   :  { %1943 = vmatpush3.bf16.msra.mxu1 %v2496_v49  ;;  %v2131_v47 = vpop.eup %2130 }
 0xc9e   :  { %1944 = vmatprep.subr.bf16.mxu1 %v2915_v42  ;;  %v1300_v48 = vadd.f32 1.0, %v2131_v47 }
 0xca0   :  { %2132 = vrcp.f32 %v1300_v48 }
 0xca1   :  { %1945 = vmatpush3.bf16.msra.mxu1 %v2503_v50 }
 0xca2   :  { %1946 = vmatprep.subr.bf16.mxu1 %v2915_v42 }
 0xca5   :  { %1947 = vmatpush3.bf16.msra.mxu1 %v2510_v51 }
 0xca6   :  { %1948 = vmatprep.subr.bf16.mxu1 %v2915_v42 }
 0xca9   :  { %1949 = vmatpush3.bf16.msra.mxu1 %v2517_v52 }
 0xcaa   :  { %1950 = vmatprep.subr.bf16.mxu1 %v2915_v42  ;;  %v2133_v26 = vpop.eup %2132 }
 0xcab   :  { %v1347_v27 = vsub.f32 1.0, %v2133_v26 }
 0xcad   :  { %1951 = vmatpush3.bf16.msra.mxu1 %v2524_v53  ;;  %v1348_v62 = vmul.f32 %v1347_v27, %v2830_v46 }
 0xd63   :  { %v1339_v49 = vpop.f32.mrb[32].mxu1 }
 0xd64   :  { %v1345_v50 = vadd.f32 %v1339_v49, %v2595_v56  ;;  %v1934_v37 = vpop.f32.mrb[33].mxu1  ;;  %v2060_v56 = vld [vmem:[#allocation8 + $0x10] sm:$0xff]  }
 0xd65   :  { %v1342_v39 = vpop.f32.mrb[34].mxu1 }
 0xd66   :  { %2134 = vtanh.f32 %v1345_v50  ;;  %v1935_v51 = vpop.f32.mrb[35].mxu1 }
 0xd70   :  { %v2135_v29 = vpop.eup %2134 }
 0xd71   :  { %v1349_v52 = vmul.f32 %v2135_v29, %v2133_v26 }
 0xd73   :  { %v1350_v30 = vadd.f32 %v1349_v52, %v1348_v62 }
 0xd75   :  { %v1354_v53 = vpack.c.bf16 %v1350_v30, %v1350_v30 }
 0xd77   :  { %1388 = vmatmul.mubr.bf16.vlgmr.msra.gmra.mrb[44].mxu0 %v1354_v53 }
 0xd78   :  { %1972 = vmatprep.mubr.msk.bf16.mxu0 %vm2291_vm0, %v2915_v42  ;;  %1957 = vmatpush3.bf16.msra.mxu0 %v2058_v23 }
 0xd79   :  { %1958 = vmatprep.subr.bf16.mxu0 %v2915_v42 }
 0xd7c   :  { %1959 = vmatpush3.bf16.msra.mxu0 %v2059_v31 }
 0xd7d   :  { %1960 = vmatprep.subr.bf16.mxu0 %v2915_v42 }
 0xd80   :  { %1961 = vmatpush3.bf16.msra.mxu0 %v2060_v56 }
 0xd81   :  { %1962 = vmatprep.subr.bf16.mxu0 %v2915_v42 }
 0xd84   :  { %1963 = vmatpush3.bf16.msra.mxu0 %v2061_v1 }
 0xd85   :  { %1964 = vmatprep.subr.bf16.mxu0 %v2915_v42 }
 0xd88   :  { %1965 = vmatpush3.bf16.msra.mxu0 %v2062_v54 }
 0xd89   :  { %1966 = vmatprep.subr.bf16.mxu0 %v2915_v42 }
 0xe4a   :  { %v1389_v32 = vpop.f32.mrb[44].mxu0 }
 0xe4b   :  { %v1396_v34 = vadd.f32 %v1389_v32, %v2565_v41  ;;  %v1391_v35 = vpop.f32.mrb[45].mxu0  ;;  %v2063_v41 = vld [vmem:[#allocation8 + $0x28] sm:$0xff]  }
 0xe4c   :  { %v1403_v3 = vadd.f32 %v1391_v35, %v2567_v43  ;;  %v1393_v36 = vpop.f32.mrb[46].mxu0  ;;  %1967 = vmatpush3.bf16.msra.mxu0 %v2063_v41  ;;  %v2064_v43 = vld [vmem:[#allocation8 + $0x30] sm:$0xff]  }
 0xe4d   :  { %v1668_v17 = vmul.f32 -1.442695, %v1396_v34  ;;  %v1394_v28 = vpop.f32.mrb[47].mxu0  ;;  %1968 = vmatprep.subr.bf16.mxu0 %v2915_v42 }
 0xe4e   :  { %v1669_v4 = vmul.f32 -1.442695, %v1403_v3 }
 0xe4f   :  { %2136 = vpow2.f32 %v1668_v17 }
 0xe50   :  { %1969 = vmatpush3.bf16.msra.mxu0 %v2064_v43 }
 0xe51   :  { %1970 = vmatprep.subr.bf16.mxu0 %v2915_v42 }
 0xe54   :  { %1971 = vmatpush3.bf16.msra.mxu0 %v2065_v58 }
 0xe59   :  { %v2137_v19 = vpop.eup %2136 }
 0xe5a   :  { %v1400_v20 = vadd.f32 1.0, %v2137_v19 }
 0xe5c   :  { %2138 = vrcp.f32 %v1400_v20 }
 0xe5d   :  { %2140 = vpow2.f32 %v1669_v4 }
 0xe66   :  { %v2139_v21 = vpop.eup %2138 }
 0xe67   :  { %v1410_v22 = vmul.f32 %v2139_v21, %v1350_v30  ;;  %v2141_v2 = vpop.eup %2140 }
 0xe68   :  { %v1407_v46 = vadd.f32 1.0, %v2141_v2 }
 0xe69   :  { %v1411_v40 = vpack.c.bf16 %v1410_v22, %v1410_v22 }
 0xe6a   :  { %2142 = vrcp.f32 %v1407_v46 }
 0xe6b   :  { %1953 = vmatmul.mubr.bf16.vlgmr.msra.gmra.mrb[36].mxu1 %v1411_v40 }
 0xe74   :  { %v2143_v7 = vpop.eup %2142 }
 0xe75   :  { %v1454_v33 = vsub.f32 1.0, %v2143_v7 }
 0xe77   :  { %v1455_v60 = vmul.f32 %v1454_v33, %v1350_v30 }
 0xf3e   :  { %v1446_v5 = vpop.f32.mrb[36].mxu1 }
 0xf3f   :  { %v1452_v6 = vadd.f32 %v1446_v5, %v2599_v55  ;;  %v1954_v18 = vpop.f32.mrb[37].mxu1 }
 0xf40   :  { %v1449_v13 = vpop.f32.mrb[38].mxu1 }
 0xf41   :  { %2144 = vtanh.f32 %v1452_v6  ;;  %v1955_v15 = vpop.f32.mrb[39].mxu1 }
 0xf4b   :  { %v2145_v57 = vpop.eup %2144 }
 0xf4c   :  { %v1456_v9 = vmul.f32 %v2145_v57, %v2143_v7 }
 0xf4e   :  { %v1457_v11 = vadd.f32 %v1456_v9, %v1455_v60 }
 0xf50   :  { %v1459_v42 = vpack.c.bf16 %v1457_v11, %v1457_v11  ;;  %1458 = vst [vmem:[#allocation9] sm:$0xff] %v1457_v11 }
 0xf52   :  { %1973 = vmatmul.mubr.bf16.vlgmr.msra.gmra.mrb[48].mxu0 %v1459_v42 }
 0xf53   :  { %2239 = shalt.err (!%p2236_p0)
}
 0xf54   :  { %s2240_s25 = scalar_lea.hbm %s2908_s7, 128 }
 0xf55   :  { %p2241_p1 = scmp.ne.s32.totalorder %s2908_s7, %s2240_s25  ;;  %p2244_p2 = scmp.lt.u32.totalorder %s2240_s25, %s2908_s7 }
 0xf57   :  { %p2246_p3 = pnand %p2244_p2, %p2241_p1 }
 0xf59   :  { %2249 = shalt.err (!%p2246_p3)
}
 0xf5a   :  { %1581 = dma.vmem_to_hbm [thread:$0]  %s1579_s4, 128, %s2908_s7, [#allocation5]   ;;  %v1670_v55 = vld [vmem:[%s2907_s6] ss:$0 sm:$0xff] }
 0xf5b   :  { %s2293_s10 = smov [#allocation10]  }
 0xf5c   :  { %s1588_s11 = sshll.u32 %s2293_s10, 4  ;;  %s1589_s11 = int_to_ptr.vmem [resolvable:$true] %s1588_s11 }
 0xf5d   :  { %s2250_s12 = scalar_lea.vmem %s1589_s11, 128  ;;  %p2255_p5 = scmp.lt.s32.totalorder %s1589_s11, %s1589_s11 }
 0xf5e   :  { %p2251_p4 = scmp.ne.s32.totalorder %s1589_s11, %s2250_s12  ;;  %p2256_p6 = scmp.lt.s32.totalorder %s2250_s12, %s2250_s12 }
 0xf60   :  { %p2257_p7 = por %p2256_p6, %p2255_p5 }
 0xf62   :  { %p2258_p8 = pnand %p2257_p7, %p2251_p4 }
0x1025   :  { %v1565_v10 = vpop.f32.mrb[48].mxu0 }
0x1026   :  { %v1566_v12 = vadd.f32 %v1670_v55, %v1565_v10  ;;  %v1974_v14 = vpop.f32.mrb[49].mxu0 }
0x1027   :  { %v1568_v16 = vpop.f32.mrb[50].mxu0 }
0x1028   :  { %1571 = vst [vmem:[#allocation10] sm:$0xff] %v1566_v12  ;;  %v1975_v8 = vpop.f32.mrb[51].mxu0 }
0x1029   :  { %2261 = shalt.err (!%p2258_p8)
}
0x102a   :  { %s2262_s6 = scalar_lea.hbm %s2909_s8, 128 }
0x102b   :  { %p2263_p9 = scmp.ne.s32.totalorder %s2909_s8, %s2262_s6  ;;  %p2266_p10 = scmp.lt.u32.totalorder %s2262_s6, %s2909_s8 }
0x102d   :  { %p2268_p11 = pnand %p2266_p10, %p2263_p9 }
0x102f   :  { %2271 = shalt.err (!%p2268_p11)
}
0x1030   :  { %1591 = dma.vmem_to_hbm [thread:$0]  %s1589_s11, 128, %s2909_s8, [#allocation11]  }
0x1031   :  { %2276 = dma.done.wait [#allocation5], 128  }
0x1032   :  { %2277 = vsyncadd [#allocation5], 4294967168 }
0x1033   :  { %2278 = dma.done.wait [#allocation11], 128  }
0x1034   :  { %2279 = vsyncadd [#allocation11], 4294967168 }
0x1035   :  { %1598 = vsyncpa [#allocation4], 1 }
0x1036   :  { %1599 = vsyncpa [#allocation7], 1 }
0x1037   :  { %1600 = vsyncpa [#allocation5], 1 }
0x1038   :  { %1601 = vsyncpa [#allocation11], 1 }

</bundles_post_ra>
